<compile_context>
chip_gen: v7x
topology: tpu7x:2x2x1
jax: 0.10.0
libtpu: 0.0.40
codegen_flags: <defaults>
</compile_context>

<pallas_src>
import functools

import jax
import jax.numpy as jnp
from jax.experimental import pallas as pl
from jax.experimental.pallas import tpu as pltpu

F32 = jnp.float32
_BN_EVAL_SCALE = (1.0 + 1e-5) ** -0.5   # eval-mode BatchNorm, running_mean=0 / running_var=1


# ------------------------------- in-kernel helpers -------------------------------
def _leaky(x, slope=0.01):
    return jnp.where(x > 0, x, slope * x)


def _elu(x):
    return jnp.where(x > 0, x, jnp.exp(jnp.minimum(x, 0.0)) - 1.0)


def _sigmoid(x):
    # exact sigmoid for the GRU gates (error of the approx reciprocal would compound
    # across num_layers + num_timesteps GRU applications).
    return 1.0 / (1.0 + jnp.exp(-x))


def _mm(a, b):
    return jnp.dot(a, b, preferred_element_type=F32)


def _nt(a, b):
    # a [R,K] contracted with b [G,K] over K  ==  a @ b.T  (flash-attention q@k.T form).
    return jax.lax.dot_general(a, b, (((1,), (1,)), ((), ())),
                               preferred_element_type=F32)


def _segment_softmax(a, gather_oh, scatter_oh):
    # a [R,1] scores; gather_oh [R,G] and scatter_oh [G,R] 0/1 membership (f32).
    # Matches PyG softmax: per-segment max shift, denominator + 1e-16.
    masked = jnp.where(gather_oh > 0.5, a, -1e30)
    m_grp = jnp.max(masked, axis=0, keepdims=True)            # [1,G] per-segment max
    m_row = _nt(gather_oh, m_grp)                             # [R,1] gathered to rows (MXU)
    e = jnp.exp(a - m_row)
    d_grp = _mm(scatter_oh, e)                                 # [G,1] per-segment sum (MXU)
    d_row = _mm(gather_oh, d_grp)                              # [R,1]
    return e * pl.reciprocal(d_row + 1e-16, approx=True)


def _gru_relu(inp, hid, w_fused, b_fused):
    # PyTorch GRUCell + ReLU as a single fused matmul.
    #   w_fused [2H,4H] = [[W_ir W_iz W_in 0 ], [W_hr W_hz 0 W_hn]]  (pre-transposed)
    #   b_fused [1,4H]  = [b_ir+b_hr | b_iz+b_hz | b_in | b_hn]
    H = hid.shape[-1]
    g = _mm(jnp.concatenate([inp, hid], axis=-1), w_fused) + b_fused   # [R,4H]
    r = _sigmoid(g[:, 0:H])
    z = _sigmoid(g[:, H:2 * H])
    n = jnp.tanh(g[:, 2 * H:3 * H] + r * g[:, 3 * H:4 * H])
    return jnp.maximum((1.0 - z) * n + z * hid, 0.0)


# --------------------------------- fused forward kernel ---------------------------------
def _build_fused_kernel(num_atom_layers, num_timesteps, out_c):
    def kernel(x_ref, ea_ref, src_ref, dst_ref, dst_row_ref, bat_ref, bat_row_ref,
               lin1w_ref, w1e_ref, wsq_ref, wgru_ref, bgru_ref, vec_ref, o_ref):
        N = x_ref.shape[0]
        E = ea_ref.shape[0]
        M = o_ref.shape[0]

        def vrow(k):                       # [1,H] row of the packed vector stack
            return vec_ref[pl.ds(k, 1), :]

        def sq(k):                         # [H,H] slice of the packed square-weight stack
            return wsq_ref[k]

        def gru(k):                        # (fused weights [2H,4H], fused bias [1,4H])
            return wgru_ref[k], bgru_ref[pl.ds(k, 1), :]

        # ---- connectivity one-hots, built in-kernel (never touch HBM) ----
        iota_en = jax.lax.broadcasted_iota(jnp.int32, (E, N), 1)
        S = (iota_en == src_ref[...]).astype(F32)                       # [E,N] gather src
        T = (iota_en == dst_ref[...]).astype(F32)                       # [E,N] gather tgt
        T_t = (jax.lax.broadcasted_iota(jnp.int32, (N, E), 0)
               == dst_row_ref[...]).astype(F32)                         # [N,E] scatter->tgt
        Pt = (jax.lax.broadcasted_iota(jnp.int32, (N, M), 1)
              == bat_ref[...]).astype(F32)                              # [N,M] mol->atom gather
        Pt_t = (jax.lax.broadcasted_iota(jnp.int32, (M, N), 0)
                == bat_row_ref[...]).astype(F32)                        # [M,N] atom->mol scatter

        # ---- x = leaky_relu(lin1(x)) ----
        x = _leaky(_mm(x_ref[...], lin1w_ref[...]) + vrow(0))

        # ---- GATEConv + ELU, then GRU + ReLU ----
        x_j = _mm(S, x)                                                 # raw source feats [E,H]
        x_i = _mm(T, x)                                                 # raw target feats [E,H]
        z = _leaky(_mm(x_j, sq(0)) + _mm(ea_ref[...], w1e_ref[...]))    # lin1([x_j, e_attr])
        a = _leaky(_nt(z, vrow(1)) + _nt(x_i, vrow(2)))                 # att_l / att_r scores
        alpha = _segment_softmax(a, T, T_t)
        # lin2 acts on RAW x_j (edge_update/message split in the reference module)
        h = _elu(_mm(T_t, _mm(x_j, sq(1)) * alpha) + vrow(3))
        x = _gru_relu(h, x, *gru(0))

        # ---- (num_layers - 1) x [GATv2Conv + ELU, GRU + ReLU] ----
        for L in range(num_atom_layers):
            vb, sb = 4 + 4 * L, 2 + 2 * L
            xl = _mm(x, sq(sb)) + vrow(vb)                              # lin_l(x)
            xr = _mm(x, sq(sb + 1)) + vrow(vb + 1)                      # lin_r(x)
            xlj = _mm(S, xl)                                            # at edge source
            xri = _mm(T, xr)                                            # at edge target
            a = _nt(_leaky(xlj + xri), vrow(vb + 2))
            alpha = _segment_softmax(a, T, T_t)
            h = _elu(_mm(T_t, xlj * alpha) + vrow(vb + 3))
            x = _gru_relu(h, x, *gru(1 + L))

        # ---- molecule readout: relu(global_add_pool) + num_timesteps GATv2/GRU steps ----
        vb = 4 + 4 * num_atom_layers
        sb = 2 + 2 * num_atom_layers
        out = jnp.maximum(_mm(Pt_t, x), 0.0)                            # [M,H]
        xl_mol = _mm(x, sq(sb)) + vrow(vb)                              # lin_l(x); x fixed below
        for _ in range(num_timesteps):
            xr_at = _mm(Pt, _mm(out, sq(sb + 1)) + vrow(vb + 1))        # lin_r(out) at atoms
            a = _nt(_leaky(xl_mol + xr_at), vrow(vb + 2))
            alpha = _segment_softmax(a, Pt, Pt_t)
            h = _elu(_mm(Pt_t, xl_mol * alpha) + vrow(vb + 3))
            out = _gru_relu(h, out, *gru(1 + num_atom_layers))

        # ---- MLP head [H, H/2, H/4, out_c]; eval BatchNorm folded to a constant scale;
        #      weights zero-padded to [H,H] so they live in the shared stack ----
        vb, sb = vb + 4, sb + 2
        y = jnp.maximum((_mm(out, sq(sb)) + vrow(vb)) * _BN_EVAL_SCALE, 0.0)
        y = jnp.maximum((_mm(y, sq(sb + 1)) + vrow(vb + 1)) * _BN_EVAL_SCALE, 0.0)
        y = _mm(y, sq(sb + 2)) + vrow(vb + 2)
        o_ref[...] = y[:, :out_c]

    return kernel


# ------------------------------------ parameters ------------------------------------
def init_params(key, c_in, hid, c_out, edge_dim, num_layers, scale=0.2):
    """Logical parameters mirroring the PyTorch module (GATv2 mode, heads=1, eval)."""
    keys = iter(jax.random.split(key, 256))

    def w(shape):
        return (scale * jax.random.normal(next(keys), shape)).astype(F32)

    def gru():
        # gate order (r, z, n); weights stored pre-transposed as [in, hid]
        return dict(wih=w((3, hid, hid)), whh=w((3, hid, hid)),
                    bih=w((3, hid)), bhh=w((3, hid)))

    return dict(
        lin1_w=w((c_in, hid)), lin1_b=w((hid,)),
        gate_w1x=w((hid, hid)), gate_w1e=w((edge_dim, hid)), gate_w2=w((hid, hid)),
        gate_att_l=w((hid,)), gate_att_r=w((hid,)), gate_bias=jnp.zeros((hid,), F32),
        gru0=gru(),
        atom=[dict(wl=w((hid, hid)), bl=w((hid,)), wr=w((hid, hid)), br=w((hid,)),
                   att=w((hid,)), bias=jnp.zeros((hid,), F32), gru=gru())
              for _ in range(num_layers - 1)],
        mol_wl=w((hid, hid)), mol_bl=w((hid,)), mol_wr=w((hid, hid)), mol_br=w((hid,)),
        mol_att=w((hid,)), mol_bias=jnp.zeros((hid,), F32), mol_gru=gru(),
        mlp_w1=w((hid, hid // 2)), mlp_b1=w((hid // 2,)),
        mlp_w2=w((hid // 2, hid // 4)), mlp_b2=w((hid // 4,)),
        mlp_w3=w((hid // 4, c_out)), mlp_b3=w((c_out,)))


def pack_params(p):
    """Pack the ~60 logical arrays into a handful of stacked kernel operands (done once)."""
    hid = p["lin1_w"].shape[1]

    def pad_mat(a):
        return jnp.zeros((hid, hid), F32).at[:a.shape[0], :a.shape[1]].set(a)

    def pad_vec(a):
        return jnp.zeros((hid,), F32).at[:a.shape[0]].set(a)

    def pack_gru(g):
        z = jnp.zeros((hid, hid), F32)
        top = jnp.concatenate([g["wih"][0], g["wih"][1], g["wih"][2], z], axis=1)
        bot = jnp.concatenate([g["whh"][0], g["whh"][1], z, g["whh"][2]], axis=1)
        wcat = jnp.concatenate([top, bot], axis=0)                      # [2H, 4H]
        bcat = jnp.concatenate([g["bih"][0] + g["bhh"][0],
                                g["bih"][1] + g["bhh"][1],
                                g["bih"][2], g["bhh"][2]])              # [4H]
        return wcat, bcat

    sq = [p["gate_w1x"], p["gate_w2"]]
    vec = [p["lin1_b"], p["gate_att_l"], p["gate_att_r"], p["gate_bias"]]
    gw, gb = [], []
    w0, b0 = pack_gru(p["gru0"]); gw.append(w0); gb.append(b0)
    for L in p["atom"]:
        sq += [L["wl"], L["wr"]]
        vec += [L["bl"], L["br"], L["att"], L["bias"]]
        wg, bg = pack_gru(L["gru"]); gw.append(wg); gb.append(bg)
    sq += [p["mol_wl"], p["mol_wr"]]
    vec += [p["mol_bl"], p["mol_br"], p["mol_att"], p["mol_bias"]]
    wg, bg = pack_gru(p["mol_gru"]); gw.append(wg); gb.append(bg)
    assert p["mlp_w3"].shape[1] <= hid, "out_channels must be <= hidden_channels for padding"
    sq += [pad_mat(p["mlp_w1"]), pad_mat(p["mlp_w2"]), pad_mat(p["mlp_w3"])]
    vec += [pad_vec(p["mlp_b1"]), pad_vec(p["mlp_b2"]), pad_vec(p["mlp_b3"])]

    return dict(lin1_w=p["lin1_w"], gate_w1e=p["gate_w1e"],
                W_sq=jnp.stack(sq),           # [2 + 2*(L-1) + 2 + 3, H, H]
                W_gru=jnp.stack(gw),          # [num_layers + 1, 2H, 4H]
                B_gru=jnp.stack(gb),          # [num_layers + 1, 4H]
                P_vec=jnp.stack(vec))         # [4 + 4*(L-1) + 4 + 3, H]


# ------------------------------------ forward pass ------------------------------------
@functools.partial(jax.jit, static_argnums=(5, 6, 7))
def attentive_fp_forward(packed, x, edge_index, edge_attr, batch,
                         num_mols, num_timesteps, out_channels):
    num_atom_layers = packed["W_gru"].shape[0] - 2          # == num_layers - 1

    e_src = edge_index[0].astype(jnp.int32)
    e_dst = edge_index[1].astype(jnp.int32)
    bat = batch.astype(jnp.int32)

    inputs = [x.astype(F32), edge_attr.astype(F32),
              e_src[:, None], e_dst[:, None], e_dst[None, :],   # tiny int32 index vectors
              bat[:, None], bat[None, :],
              packed["lin1_w"], packed["gate_w1e"], packed["W_sq"],
              packed["W_gru"], packed["B_gru"], packed["P_vec"]]

    kernel = _build_fused_kernel(num_atom_layers, num_timesteps, out_channels)
    return pl.pallas_call(
        kernel,
        out_shape=jax.ShapeDtypeStruct((num_mols, out_channels), F32),
        in_specs=[pl.BlockSpec(memory_space=pltpu.MemorySpace.VMEM)] * len(inputs),
        out_specs=pl.BlockSpec(memory_space=pltpu.MemorySpace.VMEM),
    )(*inputs)


# --------------------------------------- main ---------------------------------------
if __name__ == "__main__":
    IN_C, HID, OUT_C, EDGE_D = 16, 32, 4, 8
    NUM_LAYERS, NUM_TIMESTEPS = 2, 2
    N, M = 12, 2

    key = jax.random.PRNGKey(0)
    kx, ke, kp = jax.random.split(key, 3)

    x = jax.random.normal(kx, (N, IN_C), dtype=F32)
    # two molecules: atoms 0..6 form a ring (mol 0), atoms 7..11 form a ring (mol 1)
    batch = jnp.array([0] * 7 + [1] * 5, dtype=jnp.int32)

    def ring_edges(lo, hi):
        nodes = list(range(lo, hi))
        s, d = [], []
        for a, b in zip(nodes, nodes[1:] + nodes[:1]):
            s += [a, b]
            d += [b, a]
        return s, d

    s0, d0 = ring_edges(0, 7)
    s1, d1 = ring_edges(7, 12)
    edge_index = jnp.array([s0 + s1, d0 + d1], dtype=jnp.int32)      # [2, 24]
    edge_attr = jax.random.normal(ke, (edge_index.shape[1], EDGE_D), dtype=F32)

    params = init_params(kp, IN_C, HID, OUT_C, EDGE_D, NUM_LAYERS)
    packed = pack_params(params)                                     # packed once, outside jit

    out = attentive_fp_forward(packed, x, edge_index, edge_attr, batch,
                               M, NUM_TIMESTEPS, OUT_C)
    out = jax.block_until_ready(out)

    assert out.shape == (M, OUT_C), out.shape
    assert bool(jnp.all(jnp.isfinite(out)))
    print("KERNEL_OK")
</pallas_src>

<mosaic_0001>
module attributes {stable_mosaic.version = 11 : i64} {
  func.func @kernel(%arg0: memref<12x16xf32, #tpu.memory_space<vmem>>, %arg1: memref<24x8xf32, #tpu.memory_space<vmem>>, %arg2: memref<24x1xi32, #tpu.memory_space<vmem>>, %arg3: memref<24x1xi32, #tpu.memory_space<vmem>>, %arg4: memref<1x24xi32, #tpu.memory_space<vmem>>, %arg5: memref<12x1xi32, #tpu.memory_space<vmem>>, %arg6: memref<1x12xi32, #tpu.memory_space<vmem>>, %arg7: memref<16x32xf32, #tpu.memory_space<vmem>>, %arg8: memref<8x32xf32, #tpu.memory_space<vmem>>, %arg9: memref<9x32x32xf32, #tpu.memory_space<vmem>>, %arg10: memref<3x64x128xf32, #tpu.memory_space<vmem>>, %arg11: memref<3x128xf32, #tpu.memory_space<vmem>>, %arg12: memref<15x32xf32, #tpu.memory_space<vmem>>, %arg13: memref<2x4xf32, #tpu.memory_space<vmem>>) attributes {dimension_semantics = [], scalar_prefetch = 0 : i64, scratch_operands = 0 : i64, tpu.core_type = #tpu.core_type<tc>} {
    %0 = tpu.iota {dimensions = array<i32: 1>} : vector<24x12xi32>
    %c0 = arith.constant 0 : index
    %c0_0 = arith.constant 0 : index
    %1 = vector.load %arg2[%c0, %c0_0] : memref<24x1xi32, #tpu.memory_space<vmem>>, vector<24x1xi32>
    %2 = vector.broadcast %1 : vector<24x1xi32> to vector<24x12xi32>
    %3 = arith.cmpi eq, %0, %2 : vector<24x12xi32>
    %4 = arith.extui %3 : vector<24x12xi1> to vector<24x12xi32>
    %5 = arith.sitofp %4 : vector<24x12xi32> to vector<24x12xf32>
    %c0_1 = arith.constant 0 : index
    %c0_2 = arith.constant 0 : index
    %6 = vector.load %arg3[%c0_1, %c0_2] : memref<24x1xi32, #tpu.memory_space<vmem>>, vector<24x1xi32>
    %7 = vector.broadcast %6 : vector<24x1xi32> to vector<24x12xi32>
    %8 = arith.cmpi eq, %0, %7 : vector<24x12xi32>
    %9 = arith.extui %8 : vector<24x12xi1> to vector<24x12xi32>
    %10 = arith.sitofp %9 : vector<24x12xi32> to vector<24x12xf32>
    %11 = tpu.iota {dimensions = array<i32: 0>} : vector<12x24xi32>
    %c0_3 = arith.constant 0 : index
    %c0_4 = arith.constant 0 : index
    %12 = vector.load %arg4[%c0_3, %c0_4] : memref<1x24xi32, #tpu.memory_space<vmem>>, vector<1x24xi32>
    %13 = vector.broadcast %12 : vector<1x24xi32> to vector<12x24xi32>
    %14 = arith.cmpi eq, %11, %13 : vector<12x24xi32>
    %15 = arith.extui %14 : vector<12x24xi1> to vector<12x24xi32>
    %16 = arith.sitofp %15 : vector<12x24xi32> to vector<12x24xf32>
    %17 = tpu.iota {dimensions = array<i32: 1>} : vector<12x2xi32>
    %c0_5 = arith.constant 0 : index
    %c0_6 = arith.constant 0 : index
    %18 = vector.load %arg5[%c0_5, %c0_6] : memref<12x1xi32, #tpu.memory_space<vmem>>, vector<12x1xi32>
    %19 = vector.broadcast %18 : vector<12x1xi32> to vector<12x2xi32>
    %20 = arith.cmpi eq, %17, %19 : vector<12x2xi32>
    %21 = arith.extui %20 : vector<12x2xi1> to vector<12x2xi32>
    %22 = arith.sitofp %21 : vector<12x2xi32> to vector<12x2xf32>
    %23 = tpu.iota {dimensions = array<i32: 0>} : vector<2x12xi32>
    %c0_7 = arith.constant 0 : index
    %c0_8 = arith.constant 0 : index
    %24 = vector.load %arg6[%c0_7, %c0_8] : memref<1x12xi32, #tpu.memory_space<vmem>>, vector<1x12xi32>
    %25 = vector.broadcast %24 : vector<1x12xi32> to vector<2x12xi32>
    %26 = arith.cmpi eq, %23, %25 : vector<2x12xi32>
    %27 = arith.extui %26 : vector<2x12xi1> to vector<2x12xi32>
    %28 = arith.sitofp %27 : vector<2x12xi32> to vector<2x12xf32>
    %c0_9 = arith.constant 0 : index
    %c0_10 = arith.constant 0 : index
    %29 = vector.load %arg0[%c0_9, %c0_10] : memref<12x16xf32, #tpu.memory_space<vmem>>, vector<12x16xf32>
    %c0_11 = arith.constant 0 : index
    %c0_12 = arith.constant 0 : index
    %30 = vector.load %arg7[%c0_11, %c0_12] : memref<16x32xf32, #tpu.memory_space<vmem>>, vector<16x32xf32>
    %cst = arith.constant dense<0.000000e+00> : vector<12x32xf32>
    %31 = tpu.matmul %29, %30, %cst {dimension_numbers = #tpu.dot_dimension_numbers<[1], [0], [0], [1], [0, 0, 1, 1], [], []>} : vector<12x16xf32>, vector<16x32xf32>, vector<12x32xf32> -> vector<12x32xf32>
    %c0_13 = arith.constant 0 : index
    %c0_14 = arith.constant 0 : index
    %32 = vector.load %arg12[%c0_13, %c0_14] : memref<15x32xf32, #tpu.memory_space<vmem>>, vector<1x32xf32>
    %33 = vector.broadcast %32 : vector<1x32xf32> to vector<12x32xf32>
    %34 = arith.addf %31, %33 : vector<12x32xf32>
    %cst_15 = arith.constant 0.000000e+00 : f32
    %35 = vector.broadcast %cst_15 : f32 to vector<12x32xf32>
    %36 = arith.cmpf ogt, %34, %35 : vector<12x32xf32>
    %cst_16 = arith.constant 0.00999999977 : f32
    %37 = vector.broadcast %cst_16 : f32 to vector<12x32xf32>
    %38 = arith.mulf %37, %34 : vector<12x32xf32>
    %39 = arith.select %36, %34, %38 : vector<12x32xi1>, vector<12x32xf32>
    %cst_17 = arith.constant dense<0.000000e+00> : vector<24x32xf32>
    %40 = tpu.matmul %5, %39, %cst_17 {dimension_numbers = #tpu.dot_dimension_numbers<[1], [0], [0], [1], [0, 0, 1, 1], [], []>} : vector<24x12xf32>, vector<12x32xf32>, vector<24x32xf32> -> vector<24x32xf32>
    %cst_18 = arith.constant dense<0.000000e+00> : vector<24x32xf32>
    %41 = tpu.matmul %10, %39, %cst_18 {dimension_numbers = #tpu.dot_dimension_numbers<[1], [0], [0], [1], [0, 0, 1, 1], [], []>} : vector<24x12xf32>, vector<12x32xf32>, vector<24x32xf32> -> vector<24x32xf32>
    %c0_19 = arith.constant 0 : index
    %c0_20 = arith.constant 0 : index
    %c0_21 = arith.constant 0 : index
    %42 = vector.load %arg9[%c0_19, %c0_20, %c0_21] : memref<9x32x32xf32, #tpu.memory_space<vmem>>, vector<1x32x32xf32>
    %43 = vector.shape_cast %42 : vector<1x32x32xf32> to vector<32x32xf32>
    %cst_22 = arith.constant dense<0.000000e+00> : vector<24x32xf32>
    %44 = tpu.matmul %40, %43, %cst_22 {dimension_numbers = #tpu.dot_dimension_numbers<[1], [0], [0], [1], [0, 0, 1, 1], [], []>} : vector<24x32xf32>, vector<32x32xf32>, vector<24x32xf32> -> vector<24x32xf32>
    %c0_23 = arith.constant 0 : index
    %c0_24 = arith.constant 0 : index
    %45 = vector.load %arg1[%c0_23, %c0_24] : memref<24x8xf32, #tpu.memory_space<vmem>>, vector<24x8xf32>
    %c0_25 = arith.constant 0 : index
    %c0_26 = arith.constant 0 : index
    %46 = vector.load %arg8[%c0_25, %c0_26] : memref<8x32xf32, #tpu.memory_space<vmem>>, vector<8x32xf32>
    %cst_27 = arith.constant dense<0.000000e+00> : vector<24x32xf32>
    %47 = tpu.matmul %45, %46, %cst_27 {dimension_numbers = #tpu.dot_dimension_numbers<[1], [0], [0], [1], [0, 0, 1, 1], [], []>} : vector<24x8xf32>, vector<8x32xf32>, vector<24x32xf32> -> vector<24x32xf32>
    %48 = arith.addf %44, %47 : vector<24x32xf32>
    %cst_28 = arith.constant 0.000000e+00 : f32
    %49 = vector.broadcast %cst_28 : f32 to vector<24x32xf32>
    %50 = arith.cmpf ogt, %48, %49 : vector<24x32xf32>
    %cst_29 = arith.constant 0.00999999977 : f32
    %51 = vector.broadcast %cst_29 : f32 to vector<24x32xf32>
    %52 = arith.mulf %51, %48 : vector<24x32xf32>
    %53 = arith.select %50, %48, %52 : vector<24x32xi1>, vector<24x32xf32>
    %c1 = arith.constant 1 : index
    %c0_30 = arith.constant 0 : index
    %54 = vector.load %arg12[%c1, %c0_30] : memref<15x32xf32, #tpu.memory_space<vmem>>, vector<1x32xf32>
    %cst_31 = arith.constant dense<0.000000e+00> : vector<24x1xf32>
    %55 = tpu.matmul %53, %54, %cst_31 {dimension_numbers = #tpu.dot_dimension_numbers<[1], [1], [0], [0], [0, 0, 1, 0], [], []>} : vector<24x32xf32>, vector<1x32xf32>, vector<24x1xf32> -> vector<24x1xf32>
    %c2 = arith.constant 2 : index
    %c0_32 = arith.constant 0 : index
    %56 = vector.load %arg12[%c2, %c0_32] : memref<15x32xf32, #tpu.memory_space<vmem>>, vector<1x32xf32>
    %cst_33 = arith.constant dense<0.000000e+00> : vector<24x1xf32>
    %57 = tpu.matmul %41, %56, %cst_33 {dimension_numbers = #tpu.dot_dimension_numbers<[1], [1], [0], [0], [0, 0, 1, 0], [], []>} : vector<24x32xf32>, vector<1x32xf32>, vector<24x1xf32> -> vector<24x1xf32>
    %58 = arith.addf %55, %57 : vector<24x1xf32>
    %cst_34 = arith.constant 0.000000e+00 : f32
    %59 = vector.broadcast %cst_34 : f32 to vector<24x1xf32>
    %60 = arith.cmpf ogt, %58, %59 : vector<24x1xf32>
    %cst_35 = arith.constant 0.00999999977 : f32
    %61 = vector.broadcast %cst_35 : f32 to vector<24x1xf32>
    %62 = arith.mulf %61, %58 : vector<24x1xf32>
    %63 = arith.select %60, %58, %62 : vector<24x1xi1>, vector<24x1xf32>
    %cst_36 = arith.constant 5.000000e-01 : f32
    %64 = vector.broadcast %cst_36 : f32 to vector<24x12xf32>
    %65 = arith.cmpf ogt, %10, %64 : vector<24x12xf32>
    %cst_37 = arith.constant -1.000000e+30 : f32
    %66 = vector.shape_cast %63 : vector<24x1xf32> to vector<24x1xf32>
    %67 = vector.broadcast %66 : vector<24x1xf32> to vector<24x12xf32>
    %68 = vector.broadcast %cst_37 : f32 to vector<24x12xf32>
    %69 = arith.select %65, %67, %68 : vector<24x12xi1>, vector<24x12xf32>
    %cst_38 = arith.constant dense<0xFF800000> : vector<12xf32>
    %70 = vector.multi_reduction <maximumf>, %69, %cst_38 [0] : vector<24x12xf32> to vector<12xf32>
    %71 = vector.shape_cast %70 : vector<12xf32> to vector<1x12xf32>
    %cst_39 = arith.constant dense<0.000000e+00> : vector<24x1xf32>
    %72 = tpu.matmul %10, %71, %cst_39 {dimension_numbers = #tpu.dot_dimension_numbers<[1], [1], [0], [0], [0, 0, 1, 0], [], []>} : vector<24x12xf32>, vector<1x12xf32>, vector<24x1xf32> -> vector<24x1xf32>
    %73 = arith.subf %63, %72 : vector<24x1xf32>
    %74 = math.exp %73 : vector<24x1xf32>
    %cst_40 = arith.constant dense<0.000000e+00> : vector<12x1xf32>
    %75 = tpu.matmul %16, %74, %cst_40 {dimension_numbers = #tpu.dot_dimension_numbers<[1], [0], [0], [1], [0, 0, 1, 1], [], []>} : vector<12x24xf32>, vector<24x1xf32>, vector<12x1xf32> -> vector<12x1xf32>
    %cst_41 = arith.constant dense<0.000000e+00> : vector<24x1xf32>
    %76 = tpu.matmul %10, %75, %cst_41 {dimension_numbers = #tpu.dot_dimension_numbers<[1], [0], [0], [1], [0, 0, 1, 1], [], []>} : vector<24x12xf32>, vector<12x1xf32>, vector<24x1xf32> -> vector<24x1xf32>
    %cst_42 = arith.constant 1.000000e-16 : f32
    %77 = vector.broadcast %cst_42 : f32 to vector<24x1xf32>
    %78 = arith.addf %76, %77 : vector<24x1xf32>
    %79 = tpu.reciprocal %78 {approx = true} : vector<24x1xf32> -> vector<24x1xf32>
    %80 = arith.mulf %74, %79 : vector<24x1xf32>
    %c1_43 = arith.constant 1 : index
    %c0_44 = arith.constant 0 : index
    %c0_45 = arith.constant 0 : index
    %81 = vector.load %arg9[%c1_43, %c0_44, %c0_45] : memref<9x32x32xf32, #tpu.memory_space<vmem>>, vector<1x32x32xf32>
    %82 = vector.shape_cast %81 : vector<1x32x32xf32> to vector<32x32xf32>
    %cst_46 = arith.constant dense<0.000000e+00> : vector<24x32xf32>
    %83 = tpu.matmul %40, %82, %cst_46 {dimension_numbers = #tpu.dot_dimension_numbers<[1], [0], [0], [1], [0, 0, 1, 1], [], []>} : vector<24x32xf32>, vector<32x32xf32>, vector<24x32xf32> -> vector<24x32xf32>
    %84 = vector.broadcast %80 : vector<24x1xf32> to vector<24x32xf32>
    %85 = arith.mulf %83, %84 : vector<24x32xf32>
    %cst_47 = arith.constant dense<0.000000e+00> : vector<12x32xf32>
    %86 = tpu.matmul %16, %85, %cst_47 {dimension_numbers = #tpu.dot_dimension_numbers<[1], [0], [0], [1], [0, 0, 1, 1], [], []>} : vector<12x24xf32>, vector<24x32xf32>, vector<12x32xf32> -> vector<12x32xf32>
    %c3 = arith.constant 3 : index
    %c0_48 = arith.constant 0 : index
    %87 = vector.load %arg12[%c3, %c0_48] : memref<15x32xf32, #tpu.memory_space<vmem>>, vector<1x32xf32>
    %88 = vector.broadcast %87 : vector<1x32xf32> to vector<12x32xf32>
    %89 = arith.addf %86, %88 : vector<12x32xf32>
    %cst_49 = arith.constant 0.000000e+00 : f32
    %90 = vector.broadcast %cst_49 : f32 to vector<12x32xf32>
    %91 = arith.cmpf ogt, %89, %90 : vector<12x32xf32>
    %cst_50 = arith.constant 0.000000e+00 : f32
    %92 = vector.broadcast %cst_50 : f32 to vector<12x32xf32>
    %93 = arith.minimumf %89, %92 : vector<12x32xf32>
    %94 = math.exp %93 : vector<12x32xf32>
    %cst_51 = arith.constant 1.000000e+00 : f32
    %95 = vector.broadcast %cst_51 : f32 to vector<12x32xf32>
    %96 = arith.subf %94, %95 : vector<12x32xf32>
    %97 = arith.select %91, %89, %96 : vector<12x32xi1>, vector<12x32xf32>
    %c0_52 = arith.constant 0 : index
    %c0_53 = arith.constant 0 : index
    %c0_54 = arith.constant 0 : index
    %98 = vector.load %arg10[%c0_52, %c0_53, %c0_54] : memref<3x64x128xf32, #tpu.memory_space<vmem>>, vector<1x64x128xf32>
    %99 = vector.shape_cast %98 : vector<1x64x128xf32> to vector<64x128xf32>
    %c0_55 = arith.constant 0 : index
    %c0_56 = arith.constant 0 : index
    %100 = vector.load %arg11[%c0_55, %c0_56] : memref<3x128xf32, #tpu.memory_space<vmem>>, vector<1x128xf32>
    %101 = tpu.concatenate %97, %39 in 1 : vector<12x32xf32>, vector<12x32xf32> -> vector<12x64xf32>
    %cst_57 = arith.constant dense<0.000000e+00> : vector<12x128xf32>
    %102 = tpu.matmul %101, %99, %cst_57 {dimension_numbers = #tpu.dot_dimension_numbers<[1], [0], [0], [1], [0, 0, 1, 1], [], []>} : vector<12x64xf32>, vector<64x128xf32>, vector<12x128xf32> -> vector<12x128xf32>
    %103 = vector.broadcast %100 : vector<1x128xf32> to vector<12x128xf32>
    %104 = arith.addf %102, %103 : vector<12x128xf32>
    %105 = vector.extract_strided_slice %104 {offsets = [0, 0], sizes = [12, 32], strides = [1, 1]} : vector<12x128xf32> to vector<12x32xf32>
    %cst_58 = arith.constant 0.000000e+00 : f32
    %106 = vector.broadcast %cst_58 : f32 to vector<12x32xf32>
    %107 = arith.subf %106, %105 : vector<12x32xf32>
    %108 = math.exp %107 : vector<12x32xf32>
    %cst_59 = arith.constant 1.000000e+00 : f32
    %109 = vector.broadcast %cst_59 : f32 to vector<12x32xf32>
    %110 = arith.addf %109, %108 : vector<12x32xf32>
    %cst_60 = arith.constant 1.000000e+00 : f32
    %111 = vector.broadcast %cst_60 : f32 to vector<12x32xf32>
    %112 = arith.divf %111, %110 : vector<12x32xf32>
    %113 = vector.extract_strided_slice %104 {offsets = [0, 32], sizes = [12, 32], strides = [1, 1]} : vector<12x128xf32> to vector<12x32xf32>
    %cst_61 = arith.constant 0.000000e+00 : f32
    %114 = vector.broadcast %cst_61 : f32 to vector<12x32xf32>
    %115 = arith.subf %114, %113 : vector<12x32xf32>
    %116 = math.exp %115 : vector<12x32xf32>
    %cst_62 = arith.constant 1.000000e+00 : f32
    %117 = vector.broadcast %cst_62 : f32 to vector<12x32xf32>
    %118 = arith.addf %117, %116 : vector<12x32xf32>
    %cst_63 = arith.constant 1.000000e+00 : f32
    %119 = vector.broadcast %cst_63 : f32 to vector<12x32xf32>
    %120 = arith.divf %119, %118 : vector<12x32xf32>
    %121 = vector.extract_strided_slice %104 {offsets = [0, 64], sizes = [12, 32], strides = [1, 1]} : vector<12x128xf32> to vector<12x32xf32>
    %122 = vector.extract_strided_slice %104 {offsets = [0, 96], sizes = [12, 32], strides = [1, 1]} : vector<12x128xf32> to vector<12x32xf32>
    %123 = arith.mulf %112, %122 : vector<12x32xf32>
    %124 = arith.addf %121, %123 : vector<12x32xf32>
    %125 = math.tanh %124 : vector<12x32xf32>
    %cst_64 = arith.constant 1.000000e+00 : f32
    %126 = vector.broadcast %cst_64 : f32 to vector<12x32xf32>
    %127 = arith.subf %126, %120 : vector<12x32xf32>
    %128 = arith.mulf %127, %125 : vector<12x32xf32>
    %129 = arith.mulf %120, %39 : vector<12x32xf32>
    %130 = arith.addf %128, %129 : vector<12x32xf32>
    %cst_65 = arith.constant 0.000000e+00 : f32
    %131 = vector.broadcast %cst_65 : f32 to vector<12x32xf32>
    %132 = arith.maximumf %130, %131 : vector<12x32xf32>
    %c2_66 = arith.constant 2 : index
    %c0_67 = arith.constant 0 : index
    %c0_68 = arith.constant 0 : index
    %133 = vector.load %arg9[%c2_66, %c0_67, %c0_68] : memref<9x32x32xf32, #tpu.memory_space<vmem>>, vector<1x32x32xf32>
    %134 = vector.shape_cast %133 : vector<1x32x32xf32> to vector<32x32xf32>
    %cst_69 = arith.constant dense<0.000000e+00> : vector<12x32xf32>
    %135 = tpu.matmul %132, %134, %cst_69 {dimension_numbers = #tpu.dot_dimension_numbers<[1], [0], [0], [1], [0, 0, 1, 1], [], []>} : vector<12x32xf32>, vector<32x32xf32>, vector<12x32xf32> -> vector<12x32xf32>
    %c4 = arith.constant 4 : index
    %c0_70 = arith.constant 0 : index
    %136 = vector.load %arg12[%c4, %c0_70] : memref<15x32xf32, #tpu.memory_space<vmem>>, vector<1x32xf32>
    %137 = vector.broadcast %136 : vector<1x32xf32> to vector<12x32xf32>
    %138 = arith.addf %135, %137 : vector<12x32xf32>
    %c3_71 = arith.constant 3 : index
    %c0_72 = arith.constant 0 : index
    %c0_73 = arith.constant 0 : index
    %139 = vector.load %arg9[%c3_71, %c0_72, %c0_73] : memref<9x32x32xf32, #tpu.memory_space<vmem>>, vector<1x32x32xf32>
    %140 = vector.shape_cast %139 : vector<1x32x32xf32> to vector<32x32xf32>
    %cst_74 = arith.constant dense<0.000000e+00> : vector<12x32xf32>
    %141 = tpu.matmul %132, %140, %cst_74 {dimension_numbers = #tpu.dot_dimension_numbers<[1], [0], [0], [1], [0, 0, 1, 1], [], []>} : vector<12x32xf32>, vector<32x32xf32>, vector<12x32xf32> -> vector<12x32xf32>
    %c5 = arith.constant 5 : index
    %c0_75 = arith.constant 0 : index
    %142 = vector.load %arg12[%c5, %c0_75] : memref<15x32xf32, #tpu.memory_space<vmem>>, vector<1x32xf32>
    %143 = vector.broadcast %142 : vector<1x32xf32> to vector<12x32xf32>
    %144 = arith.addf %141, %143 : vector<12x32xf32>
    %cst_76 = arith.constant dense<0.000000e+00> : vector<24x32xf32>
    %145 = tpu.matmul %5, %138, %cst_76 {dimension_numbers = #tpu.dot_dimension_numbers<[1], [0], [0], [1], [0, 0, 1, 1], [], []>} : vector<24x12xf32>, vector<12x32xf32>, vector<24x32xf32> -> vector<24x32xf32>
    %cst_77 = arith.constant dense<0.000000e+00> : vector<24x32xf32>
    %146 = tpu.matmul %10, %144, %cst_77 {dimension_numbers = #tpu.dot_dimension_numbers<[1], [0], [0], [1], [0, 0, 1, 1], [], []>} : vector<24x12xf32>, vector<12x32xf32>, vector<24x32xf32> -> vector<24x32xf32>
    %147 = arith.addf %145, %146 : vector<24x32xf32>
    %cst_78 = arith.constant 0.000000e+00 : f32
    %148 = vector.broadcast %cst_78 : f32 to vector<24x32xf32>
    %149 = arith.cmpf ogt, %147, %148 : vector<24x32xf32>
    %cst_79 = arith.constant 0.00999999977 : f32
    %150 = vector.broadcast %cst_79 : f32 to vector<24x32xf32>
    %151 = arith.mulf %150, %147 : vector<24x32xf32>
    %152 = arith.select %149, %147, %151 : vector<24x32xi1>, vector<24x32xf32>
    %c6 = arith.constant 6 : index
    %c0_80 = arith.constant 0 : index
    %153 = vector.load %arg12[%c6, %c0_80] : memref<15x32xf32, #tpu.memory_space<vmem>>, vector<1x32xf32>
    %cst_81 = arith.constant dense<0.000000e+00> : vector<24x1xf32>
    %154 = tpu.matmul %152, %153, %cst_81 {dimension_numbers = #tpu.dot_dimension_numbers<[1], [1], [0], [0], [0, 0, 1, 0], [], []>} : vector<24x32xf32>, vector<1x32xf32>, vector<24x1xf32> -> vector<24x1xf32>
    %cst_82 = arith.constant 5.000000e-01 : f32
    %155 = vector.broadcast %cst_82 : f32 to vector<24x12xf32>
    %156 = arith.cmpf ogt, %10, %155 : vector<24x12xf32>
    %cst_83 = arith.constant -1.000000e+30 : f32
    %157 = vector.shape_cast %154 : vector<24x1xf32> to vector<24x1xf32>
    %158 = vector.broadcast %157 : vector<24x1xf32> to vector<24x12xf32>
    %159 = vector.broadcast %cst_83 : f32 to vector<24x12xf32>
    %160 = arith.select %156, %158, %159 : vector<24x12xi1>, vector<24x12xf32>
    %cst_84 = arith.constant dense<0xFF800000> : vector<12xf32>
    %161 = vector.multi_reduction <maximumf>, %160, %cst_84 [0] : vector<24x12xf32> to vector<12xf32>
    %162 = vector.shape_cast %161 : vector<12xf32> to vector<1x12xf32>
    %cst_85 = arith.constant dense<0.000000e+00> : vector<24x1xf32>
    %163 = tpu.matmul %10, %162, %cst_85 {dimension_numbers = #tpu.dot_dimension_numbers<[1], [1], [0], [0], [0, 0, 1, 0], [], []>} : vector<24x12xf32>, vector<1x12xf32>, vector<24x1xf32> -> vector<24x1xf32>
    %164 = arith.subf %154, %163 : vector<24x1xf32>
    %165 = math.exp %164 : vector<24x1xf32>
    %cst_86 = arith.constant dense<0.000000e+00> : vector<12x1xf32>
    %166 = tpu.matmul %16, %165, %cst_86 {dimension_numbers = #tpu.dot_dimension_numbers<[1], [0], [0], [1], [0, 0, 1, 1], [], []>} : vector<12x24xf32>, vector<24x1xf32>, vector<12x1xf32> -> vector<12x1xf32>
    %cst_87 = arith.constant dense<0.000000e+00> : vector<24x1xf32>
    %167 = tpu.matmul %10, %166, %cst_87 {dimension_numbers = #tpu.dot_dimension_numbers<[1], [0], [0], [1], [0, 0, 1, 1], [], []>} : vector<24x12xf32>, vector<12x1xf32>, vector<24x1xf32> -> vector<24x1xf32>
    %cst_88 = arith.constant 1.000000e-16 : f32
    %168 = vector.broadcast %cst_88 : f32 to vector<24x1xf32>
    %169 = arith.addf %167, %168 : vector<24x1xf32>
    %170 = tpu.reciprocal %169 {approx = true} : vector<24x1xf32> -> vector<24x1xf32>
    %171 = arith.mulf %165, %170 : vector<24x1xf32>
    %172 = vector.broadcast %171 : vector<24x1xf32> to vector<24x32xf32>
    %173 = arith.mulf %145, %172 : vector<24x32xf32>
    %cst_89 = arith.constant dense<0.000000e+00> : vector<12x32xf32>
    %174 = tpu.matmul %16, %173, %cst_89 {dimension_numbers = #tpu.dot_dimension_numbers<[1], [0], [0], [1], [0, 0, 1, 1], [], []>} : vector<12x24xf32>, vector<24x32xf32>, vector<12x32xf32> -> vector<12x32xf32>
    %c7 = arith.constant 7 : index
    %c0_90 = arith.constant 0 : index
    %175 = vector.load %arg12[%c7, %c0_90] : memref<15x32xf32, #tpu.memory_space<vmem>>, vector<1x32xf32>
    %176 = vector.broadcast %175 : vector<1x32xf32> to vector<12x32xf32>
    %177 = arith.addf %174, %176 : vector<12x32xf32>
    %cst_91 = arith.constant 0.000000e+00 : f32
    %178 = vector.broadcast %cst_91 : f32 to vector<12x32xf32>
    %179 = arith.cmpf ogt, %177, %178 : vector<12x32xf32>
    %cst_92 = arith.constant 0.000000e+00 : f32
    %180 = vector.broadcast %cst_92 : f32 to vector<12x32xf32>
    %181 = arith.minimumf %177, %180 : vector<12x32xf32>
    %182 = math.exp %181 : vector<12x32xf32>
    %cst_93 = arith.constant 1.000000e+00 : f32
    %183 = vector.broadcast %cst_93 : f32 to vector<12x32xf32>
    %184 = arith.subf %182, %183 : vector<12x32xf32>
    %185 = arith.select %179, %177, %184 : vector<12x32xi1>, vector<12x32xf32>
    %c1_94 = arith.constant 1 : index
    %c0_95 = arith.constant 0 : index
    %c0_96 = arith.constant 0 : index
    %186 = vector.load %arg10[%c1_94, %c0_95, %c0_96] : memref<3x64x128xf32, #tpu.memory_space<vmem>>, vector<1x64x128xf32>
    %187 = vector.shape_cast %186 : vector<1x64x128xf32> to vector<64x128xf32>
    %c1_97 = arith.constant 1 : index
    %c0_98 = arith.constant 0 : index
    %188 = vector.load %arg11[%c1_97, %c0_98] : memref<3x128xf32, #tpu.memory_space<vmem>>, vector<1x128xf32>
    %189 = tpu.concatenate %185, %132 in 1 : vector<12x32xf32>, vector<12x32xf32> -> vector<12x64xf32>
    %cst_99 = arith.constant dense<0.000000e+00> : vector<12x128xf32>
    %190 = tpu.matmul %189, %187, %cst_99 {dimension_numbers = #tpu.dot_dimension_numbers<[1], [0], [0], [1], [0, 0, 1, 1], [], []>} : vector<12x64xf32>, vector<64x128xf32>, vector<12x128xf32> -> vector<12x128xf32>
    %191 = vector.broadcast %188 : vector<1x128xf32> to vector<12x128xf32>
    %192 = arith.addf %190, %191 : vector<12x128xf32>
    %193 = vector.extract_strided_slice %192 {offsets = [0, 0], sizes = [12, 32], strides = [1, 1]} : vector<12x128xf32> to vector<12x32xf32>
    %cst_100 = arith.constant 0.000000e+00 : f32
    %194 = vector.broadcast %cst_100 : f32 to vector<12x32xf32>
    %195 = arith.subf %194, %193 : vector<12x32xf32>
    %196 = math.exp %195 : vector<12x32xf32>
    %cst_101 = arith.constant 1.000000e+00 : f32
    %197 = vector.broadcast %cst_101 : f32 to vector<12x32xf32>
    %198 = arith.addf %197, %196 : vector<12x32xf32>
    %cst_102 = arith.constant 1.000000e+00 : f32
    %199 = vector.broadcast %cst_102 : f32 to vector<12x32xf32>
    %200 = arith.divf %199, %198 : vector<12x32xf32>
    %201 = vector.extract_strided_slice %192 {offsets = [0, 32], sizes = [12, 32], strides = [1, 1]} : vector<12x128xf32> to vector<12x32xf32>
    %cst_103 = arith.constant 0.000000e+00 : f32
    %202 = vector.broadcast %cst_103 : f32 to vector<12x32xf32>
    %203 = arith.subf %202, %201 : vector<12x32xf32>
    %204 = math.exp %203 : vector<12x32xf32>
    %cst_104 = arith.constant 1.000000e+00 : f32
    %205 = vector.broadcast %cst_104 : f32 to vector<12x32xf32>
    %206 = arith.addf %205, %204 : vector<12x32xf32>
    %cst_105 = arith.constant 1.000000e+00 : f32
    %207 = vector.broadcast %cst_105 : f32 to vector<12x32xf32>
    %208 = arith.divf %207, %206 : vector<12x32xf32>
    %209 = vector.extract_strided_slice %192 {offsets = [0, 64], sizes = [12, 32], strides = [1, 1]} : vector<12x128xf32> to vector<12x32xf32>
    %210 = vector.extract_strided_slice %192 {offsets = [0, 96], sizes = [12, 32], strides = [1, 1]} : vector<12x128xf32> to vector<12x32xf32>
    %211 = arith.mulf %200, %210 : vector<12x32xf32>
    %212 = arith.addf %209, %211 : vector<12x32xf32>
    %213 = math.tanh %212 : vector<12x32xf32>
    %cst_106 = arith.constant 1.000000e+00 : f32
    %214 = vector.broadcast %cst_106 : f32 to vector<12x32xf32>
    %215 = arith.subf %214, %208 : vector<12x32xf32>
    %216 = arith.mulf %215, %213 : vector<12x32xf32>
    %217 = arith.mulf %208, %132 : vector<12x32xf32>
    %218 = arith.addf %216, %217 : vector<12x32xf32>
    %cst_107 = arith.constant 0.000000e+00 : f32
    %219 = vector.broadcast %cst_107 : f32 to vector<12x32xf32>
    %220 = arith.maximumf %218, %219 : vector<12x32xf32>
    %cst_108 = arith.constant dense<0.000000e+00> : vector<2x32xf32>
    %221 = tpu.matmul %28, %220, %cst_108 {dimension_numbers = #tpu.dot_dimension_numbers<[1], [0], [0], [1], [0, 0, 1, 1], [], []>} : vector<2x12xf32>, vector<12x32xf32>, vector<2x32xf32> -> vector<2x32xf32>
    %cst_109 = arith.constant 0.000000e+00 : f32
    %222 = vector.broadcast %cst_109 : f32 to vector<2x32xf32>
    %223 = arith.maximumf %221, %222 : vector<2x32xf32>
    %c4_110 = arith.constant 4 : index
    %c0_111 = arith.constant 0 : index
    %c0_112 = arith.constant 0 : index
    %224 = vector.load %arg9[%c4_110, %c0_111, %c0_112] : memref<9x32x32xf32, #tpu.memory_space<vmem>>, vector<1x32x32xf32>
    %225 = vector.shape_cast %224 : vector<1x32x32xf32> to vector<32x32xf32>
    %cst_113 = arith.constant dense<0.000000e+00> : vector<12x32xf32>
    %226 = tpu.matmul %220, %225, %cst_113 {dimension_numbers = #tpu.dot_dimension_numbers<[1], [0], [0], [1], [0, 0, 1, 1], [], []>} : vector<12x32xf32>, vector<32x32xf32>, vector<12x32xf32> -> vector<12x32xf32>
    %c8 = arith.constant 8 : index
    %c0_114 = arith.constant 0 : index
    %227 = vector.load %arg12[%c8, %c0_114] : memref<15x32xf32, #tpu.memory_space<vmem>>, vector<1x32xf32>
    %228 = vector.broadcast %227 : vector<1x32xf32> to vector<12x32xf32>
    %229 = arith.addf %226, %228 : vector<12x32xf32>
    %c5_115 = arith.constant 5 : index
    %c0_116 = arith.constant 0 : index
    %c0_117 = arith.constant 0 : index
    %230 = vector.load %arg9[%c5_115, %c0_116, %c0_117] : memref<9x32x32xf32, #tpu.memory_space<vmem>>, vector<1x32x32xf32>
    %231 = vector.shape_cast %230 : vector<1x32x32xf32> to vector<32x32xf32>
    %cst_118 = arith.constant dense<0.000000e+00> : vector<2x32xf32>
    %232 = tpu.matmul %223, %231, %cst_118 {dimension_numbers = #tpu.dot_dimension_numbers<[1], [0], [0], [1], [0, 0, 1, 1], [], []>} : vector<2x32xf32>, vector<32x32xf32>, vector<2x32xf32> -> vector<2x32xf32>
    %c9 = arith.constant 9 : index
    %c0_119 = arith.constant 0 : index
    %233 = vector.load %arg12[%c9, %c0_119] : memref<15x32xf32, #tpu.memory_space<vmem>>, vector<1x32xf32>
    %234 = vector.broadcast %233 : vector<1x32xf32> to vector<2x32xf32>
    %235 = arith.addf %232, %234 : vector<2x32xf32>
    %cst_120 = arith.constant dense<0.000000e+00> : vector<12x32xf32>
    %236 = tpu.matmul %22, %235, %cst_120 {dimension_numbers = #tpu.dot_dimension_numbers<[1], [0], [0], [1], [0, 0, 1, 1], [], []>} : vector<12x2xf32>, vector<2x32xf32>, vector<12x32xf32> -> vector<12x32xf32>
    %237 = arith.addf %229, %236 : vector<12x32xf32>
    %cst_121 = arith.constant 0.000000e+00 : f32
    %238 = vector.broadcast %cst_121 : f32 to vector<12x32xf32>
    %239 = arith.cmpf ogt, %237, %238 : vector<12x32xf32>
    %cst_122 = arith.constant 0.00999999977 : f32
    %240 = vector.broadcast %cst_122 : f32 to vector<12x32xf32>
    %241 = arith.mulf %240, %237 : vector<12x32xf32>
    %242 = arith.select %239, %237, %241 : vector<12x32xi1>, vector<12x32xf32>
    %c10 = arith.constant 10 : index
    %c0_123 = arith.constant 0 : index
    %243 = vector.load %arg12[%c10, %c0_123] : memref<15x32xf32, #tpu.memory_space<vmem>>, vector<1x32xf32>
    %cst_124 = arith.constant dense<0.000000e+00> : vector<12x1xf32>
    %244 = tpu.matmul %242, %243, %cst_124 {dimension_numbers = #tpu.dot_dimension_numbers<[1], [1], [0], [0], [0, 0, 1, 0], [], []>} : vector<12x32xf32>, vector<1x32xf32>, vector<12x1xf32> -> vector<12x1xf32>
    %cst_125 = arith.constant 5.000000e-01 : f32
    %245 = vector.broadcast %cst_125 : f32 to vector<12x2xf32>
    %246 = arith.cmpf ogt, %22, %245 : vector<12x2xf32>
    %cst_126 = arith.constant -1.000000e+30 : f32
    %247 = vector.shape_cast %244 : vector<12x1xf32> to vector<12x1xf32>
    %248 = vector.broadcast %247 : vector<12x1xf32> to vector<12x2xf32>
    %249 = vector.broadcast %cst_126 : f32 to vector<12x2xf32>
    %250 = arith.select %246, %248, %249 : vector<12x2xi1>, vector<12x2xf32>
    %cst_127 = arith.constant dense<0xFF800000> : vector<2xf32>
    %251 = vector.multi_reduction <maximumf>, %250, %cst_127 [0] : vector<12x2xf32> to vector<2xf32>
    %252 = vector.shape_cast %251 : vector<2xf32> to vector<1x2xf32>
    %cst_128 = arith.constant dense<0.000000e+00> : vector<12x1xf32>
    %253 = tpu.matmul %22, %252, %cst_128 {dimension_numbers = #tpu.dot_dimension_numbers<[1], [1], [0], [0], [0, 0, 1, 0], [], []>} : vector<12x2xf32>, vector<1x2xf32>, vector<12x1xf32> -> vector<12x1xf32>
    %254 = arith.subf %244, %253 : vector<12x1xf32>
    %255 = math.exp %254 : vector<12x1xf32>
    %cst_129 = arith.constant dense<0.000000e+00> : vector<2x1xf32>
    %256 = tpu.matmul %28, %255, %cst_129 {dimension_numbers = #tpu.dot_dimension_numbers<[1], [0], [0], [1], [0, 0, 1, 1], [], []>} : vector<2x12xf32>, vector<12x1xf32>, vector<2x1xf32> -> vector<2x1xf32>
    %cst_130 = arith.constant dense<0.000000e+00> : vector<12x1xf32>
    %257 = tpu.matmul %22, %256, %cst_130 {dimension_numbers = #tpu.dot_dimension_numbers<[1], [0], [0], [1], [0, 0, 1, 1], [], []>} : vector<12x2xf32>, vector<2x1xf32>, vector<12x1xf32> -> vector<12x1xf32>
    %cst_131 = arith.constant 1.000000e-16 : f32
    %258 = vector.broadcast %cst_131 : f32 to vector<12x1xf32>
    %259 = arith.addf %257, %258 : vector<12x1xf32>
    %260 = tpu.reciprocal %259 {approx = true} : vector<12x1xf32> -> vector<12x1xf32>
    %261 = arith.mulf %255, %260 : vector<12x1xf32>
    %262 = vector.broadcast %261 : vector<12x1xf32> to vector<12x32xf32>
    %263 = arith.mulf %229, %262 : vector<12x32xf32>
    %cst_132 = arith.constant dense<0.000000e+00> : vector<2x32xf32>
    %264 = tpu.matmul %28, %263, %cst_132 {dimension_numbers = #tpu.dot_dimension_numbers<[1], [0], [0], [1], [0, 0, 1, 1], [], []>} : vector<2x12xf32>, vector<12x32xf32>, vector<2x32xf32> -> vector<2x32xf32>
    %c11 = arith.constant 11 : index
    %c0_133 = arith.constant 0 : index
    %265 = vector.load %arg12[%c11, %c0_133] : memref<15x32xf32, #tpu.memory_space<vmem>>, vector<1x32xf32>
    %266 = vector.broadcast %265 : vector<1x32xf32> to vector<2x32xf32>
    %267 = arith.addf %264, %266 : vector<2x32xf32>
    %cst_134 = arith.constant 0.000000e+00 : f32
    %268 = vector.broadcast %cst_134 : f32 to vector<2x32xf32>
    %269 = arith.cmpf ogt, %267, %268 : vector<2x32xf32>
    %cst_135 = arith.constant 0.000000e+00 : f32
    %270 = vector.broadcast %cst_135 : f32 to vector<2x32xf32>
    %271 = arith.minimumf %267, %270 : vector<2x32xf32>
    %272 = math.exp %271 : vector<2x32xf32>
    %cst_136 = arith.constant 1.000000e+00 : f32
    %273 = vector.broadcast %cst_136 : f32 to vector<2x32xf32>
    %274 = arith.subf %272, %273 : vector<2x32xf32>
    %275 = arith.select %269, %267, %274 : vector<2x32xi1>, vector<2x32xf32>
    %c2_137 = arith.constant 2 : index
    %c0_138 = arith.constant 0 : index
    %c0_139 = arith.constant 0 : index
    %276 = vector.load %arg10[%c2_137, %c0_138, %c0_139] : memref<3x64x128xf32, #tpu.memory_space<vmem>>, vector<1x64x128xf32>
    %277 = vector.shape_cast %276 : vector<1x64x128xf32> to vector<64x128xf32>
    %c2_140 = arith.constant 2 : index
    %c0_141 = arith.constant 0 : index
    %278 = vector.load %arg11[%c2_140, %c0_141] : memref<3x128xf32, #tpu.memory_space<vmem>>, vector<1x128xf32>
    %279 = tpu.concatenate %275, %223 in 1 : vector<2x32xf32>, vector<2x32xf32> -> vector<2x64xf32>
    %cst_142 = arith.constant dense<0.000000e+00> : vector<2x128xf32>
    %280 = tpu.matmul %279, %277, %cst_142 {dimension_numbers = #tpu.dot_dimension_numbers<[1], [0], [0], [1], [0, 0, 1, 1], [], []>} : vector<2x64xf32>, vector<64x128xf32>, vector<2x128xf32> -> vector<2x128xf32>
    %281 = vector.broadcast %278 : vector<1x128xf32> to vector<2x128xf32>
    %282 = arith.addf %280, %281 : vector<2x128xf32>
    %283 = vector.extract_strided_slice %282 {offsets = [0, 0], sizes = [2, 32], strides = [1, 1]} : vector<2x128xf32> to vector<2x32xf32>
    %cst_143 = arith.constant 0.000000e+00 : f32
    %284 = vector.broadcast %cst_143 : f32 to vector<2x32xf32>
    %285 = arith.subf %284, %283 : vector<2x32xf32>
    %286 = math.exp %285 : vector<2x32xf32>
    %cst_144 = arith.constant 1.000000e+00 : f32
    %287 = vector.broadcast %cst_144 : f32 to vector<2x32xf32>
    %288 = arith.addf %287, %286 : vector<2x32xf32>
    %cst_145 = arith.constant 1.000000e+00 : f32
    %289 = vector.broadcast %cst_145 : f32 to vector<2x32xf32>
    %290 = arith.divf %289, %288 : vector<2x32xf32>
    %291 = vector.extract_strided_slice %282 {offsets = [0, 32], sizes = [2, 32], strides = [1, 1]} : vector<2x128xf32> to vector<2x32xf32>
    %cst_146 = arith.constant 0.000000e+00 : f32
    %292 = vector.broadcast %cst_146 : f32 to vector<2x32xf32>
    %293 = arith.subf %292, %291 : vector<2x32xf32>
    %294 = math.exp %293 : vector<2x32xf32>
    %cst_147 = arith.constant 1.000000e+00 : f32
    %295 = vector.broadcast %cst_147 : f32 to vector<2x32xf32>
    %296 = arith.addf %295, %294 : vector<2x32xf32>
    %cst_148 = arith.constant 1.000000e+00 : f32
    %297 = vector.broadcast %cst_148 : f32 to vector<2x32xf32>
    %298 = arith.divf %297, %296 : vector<2x32xf32>
    %299 = vector.extract_strided_slice %282 {offsets = [0, 64], sizes = [2, 32], strides = [1, 1]} : vector<2x128xf32> to vector<2x32xf32>
    %300 = vector.extract_strided_slice %282 {offsets = [0, 96], sizes = [2, 32], strides = [1, 1]} : vector<2x128xf32> to vector<2x32xf32>
    %301 = arith.mulf %290, %300 : vector<2x32xf32>
    %302 = arith.addf %299, %301 : vector<2x32xf32>
    %303 = math.tanh %302 : vector<2x32xf32>
    %cst_149 = arith.constant 1.000000e+00 : f32
    %304 = vector.broadcast %cst_149 : f32 to vector<2x32xf32>
    %305 = arith.subf %304, %298 : vector<2x32xf32>
    %306 = arith.mulf %305, %303 : vector<2x32xf32>
    %307 = arith.mulf %298, %223 : vector<2x32xf32>
    %308 = arith.addf %306, %307 : vector<2x32xf32>
    %cst_150 = arith.constant 0.000000e+00 : f32
    %309 = vector.broadcast %cst_150 : f32 to vector<2x32xf32>
    %310 = arith.maximumf %308, %309 : vector<2x32xf32>
    %c5_151 = arith.constant 5 : index
    %c0_152 = arith.constant 0 : index
    %c0_153 = arith.constant 0 : index
    %311 = vector.load %arg9[%c5_151, %c0_152, %c0_153] : memref<9x32x32xf32, #tpu.memory_space<vmem>>, vector<1x32x32xf32>
    %312 = vector.shape_cast %311 : vector<1x32x32xf32> to vector<32x32xf32>
    %cst_154 = arith.constant dense<0.000000e+00> : vector<2x32xf32>
    %313 = tpu.matmul %310, %312, %cst_154 {dimension_numbers = #tpu.dot_dimension_numbers<[1], [0], [0], [1], [0, 0, 1, 1], [], []>} : vector<2x32xf32>, vector<32x32xf32>, vector<2x32xf32> -> vector<2x32xf32>
    %c9_155 = arith.constant 9 : index
    %c0_156 = arith.constant 0 : index
    %314 = vector.load %arg12[%c9_155, %c0_156] : memref<15x32xf32, #tpu.memory_space<vmem>>, vector<1x32xf32>
    %315 = vector.broadcast %314 : vector<1x32xf32> to vector<2x32xf32>
    %316 = arith.addf %313, %315 : vector<2x32xf32>
    %cst_157 = arith.constant dense<0.000000e+00> : vector<12x32xf32>
    %317 = tpu.matmul %22, %316, %cst_157 {dimension_numbers = #tpu.dot_dimension_numbers<[1], [0], [0], [1], [0, 0, 1, 1], [], []>} : vector<12x2xf32>, vector<2x32xf32>, vector<12x32xf32> -> vector<12x32xf32>
    %318 = arith.addf %229, %317 : vector<12x32xf32>
    %cst_158 = arith.constant 0.000000e+00 : f32
    %319 = vector.broadcast %cst_158 : f32 to vector<12x32xf32>
    %320 = arith.cmpf ogt, %318, %319 : vector<12x32xf32>
    %cst_159 = arith.constant 0.00999999977 : f32
    %321 = vector.broadcast %cst_159 : f32 to vector<12x32xf32>
    %322 = arith.mulf %321, %318 : vector<12x32xf32>
    %323 = arith.select %320, %318, %322 : vector<12x32xi1>, vector<12x32xf32>
    %c10_160 = arith.constant 10 : index
    %c0_161 = arith.constant 0 : index
    %324 = vector.load %arg12[%c10_160, %c0_161] : memref<15x32xf32, #tpu.memory_space<vmem>>, vector<1x32xf32>
    %cst_162 = arith.constant dense<0.000000e+00> : vector<12x1xf32>
    %325 = tpu.matmul %323, %324, %cst_162 {dimension_numbers = #tpu.dot_dimension_numbers<[1], [1], [0], [0], [0, 0, 1, 0], [], []>} : vector<12x32xf32>, vector<1x32xf32>, vector<12x1xf32> -> vector<12x1xf32>
    %cst_163 = arith.constant 5.000000e-01 : f32
    %326 = vector.broadcast %cst_163 : f32 to vector<12x2xf32>
    %327 = arith.cmpf ogt, %22, %326 : vector<12x2xf32>
    %cst_164 = arith.constant -1.000000e+30 : f32
    %328 = vector.shape_cast %325 : vector<12x1xf32> to vector<12x1xf32>
    %329 = vector.broadcast %328 : vector<12x1xf32> to vector<12x2xf32>
    %330 = vector.broadcast %cst_164 : f32 to vector<12x2xf32>
    %331 = arith.select %327, %329, %330 : vector<12x2xi1>, vector<12x2xf32>
    %cst_165 = arith.constant dense<0xFF800000> : vector<2xf32>
    %332 = vector.multi_reduction <maximumf>, %331, %cst_165 [0] : vector<12x2xf32> to vector<2xf32>
    %333 = vector.shape_cast %332 : vector<2xf32> to vector<1x2xf32>
    %cst_166 = arith.constant dense<0.000000e+00> : vector<12x1xf32>
    %334 = tpu.matmul %22, %333, %cst_166 {dimension_numbers = #tpu.dot_dimension_numbers<[1], [1], [0], [0], [0, 0, 1, 0], [], []>} : vector<12x2xf32>, vector<1x2xf32>, vector<12x1xf32> -> vector<12x1xf32>
    %335 = arith.subf %325, %334 : vector<12x1xf32>
    %336 = math.exp %335 : vector<12x1xf32>
    %cst_167 = arith.constant dense<0.000000e+00> : vector<2x1xf32>
    %337 = tpu.matmul %28, %336, %cst_167 {dimension_numbers = #tpu.dot_dimension_numbers<[1], [0], [0], [1], [0, 0, 1, 1], [], []>} : vector<2x12xf32>, vector<12x1xf32>, vector<2x1xf32> -> vector<2x1xf32>
    %cst_168 = arith.constant dense<0.000000e+00> : vector<12x1xf32>
    %338 = tpu.matmul %22, %337, %cst_168 {dimension_numbers = #tpu.dot_dimension_numbers<[1], [0], [0], [1], [0, 0, 1, 1], [], []>} : vector<12x2xf32>, vector<2x1xf32>, vector<12x1xf32> -> vector<12x1xf32>
    %cst_169 = arith.constant 1.000000e-16 : f32
    %339 = vector.broadcast %cst_169 : f32 to vector<12x1xf32>
    %340 = arith.addf %338, %339 : vector<12x1xf32>
    %341 = tpu.reciprocal %340 {approx = true} : vector<12x1xf32> -> vector<12x1xf32>
    %342 = arith.mulf %336, %341 : vector<12x1xf32>
    %343 = vector.broadcast %342 : vector<12x1xf32> to vector<12x32xf32>
    %344 = arith.mulf %229, %343 : vector<12x32xf32>
    %cst_170 = arith.constant dense<0.000000e+00> : vector<2x32xf32>
    %345 = tpu.matmul %28, %344, %cst_170 {dimension_numbers = #tpu.dot_dimension_numbers<[1], [0], [0], [1], [0, 0, 1, 1], [], []>} : vector<2x12xf32>, vector<12x32xf32>, vector<2x32xf32> -> vector<2x32xf32>
    %c11_171 = arith.constant 11 : index
    %c0_172 = arith.constant 0 : index
    %346 = vector.load %arg12[%c11_171, %c0_172] : memref<15x32xf32, #tpu.memory_space<vmem>>, vector<1x32xf32>
    %347 = vector.broadcast %346 : vector<1x32xf32> to vector<2x32xf32>
    %348 = arith.addf %345, %347 : vector<2x32xf32>
    %cst_173 = arith.constant 0.000000e+00 : f32
    %349 = vector.broadcast %cst_173 : f32 to vector<2x32xf32>
    %350 = arith.cmpf ogt, %348, %349 : vector<2x32xf32>
    %cst_174 = arith.constant 0.000000e+00 : f32
    %351 = vector.broadcast %cst_174 : f32 to vector<2x32xf32>
    %352 = arith.minimumf %348, %351 : vector<2x32xf32>
    %353 = math.exp %352 : vector<2x32xf32>
    %cst_175 = arith.constant 1.000000e+00 : f32
    %354 = vector.broadcast %cst_175 : f32 to vector<2x32xf32>
    %355 = arith.subf %353, %354 : vector<2x32xf32>
    %356 = arith.select %350, %348, %355 : vector<2x32xi1>, vector<2x32xf32>
    %c2_176 = arith.constant 2 : index
    %c0_177 = arith.constant 0 : index
    %c0_178 = arith.constant 0 : index
    %357 = vector.load %arg10[%c2_176, %c0_177, %c0_178] : memref<3x64x128xf32, #tpu.memory_space<vmem>>, vector<1x64x128xf32>
    %358 = vector.shape_cast %357 : vector<1x64x128xf32> to vector<64x128xf32>
    %c2_179 = arith.constant 2 : index
    %c0_180 = arith.constant 0 : index
    %359 = vector.load %arg11[%c2_179, %c0_180] : memref<3x128xf32, #tpu.memory_space<vmem>>, vector<1x128xf32>
    %360 = tpu.concatenate %356, %310 in 1 : vector<2x32xf32>, vector<2x32xf32> -> vector<2x64xf32>
    %cst_181 = arith.constant dense<0.000000e+00> : vector<2x128xf32>
    %361 = tpu.matmul %360, %358, %cst_181 {dimension_numbers = #tpu.dot_dimension_numbers<[1], [0], [0], [1], [0, 0, 1, 1], [], []>} : vector<2x64xf32>, vector<64x128xf32>, vector<2x128xf32> -> vector<2x128xf32>
    %362 = vector.broadcast %359 : vector<1x128xf32> to vector<2x128xf32>
    %363 = arith.addf %361, %362 : vector<2x128xf32>
    %364 = vector.extract_strided_slice %363 {offsets = [0, 0], sizes = [2, 32], strides = [1, 1]} : vector<2x128xf32> to vector<2x32xf32>
    %cst_182 = arith.constant 0.000000e+00 : f32
    %365 = vector.broadcast %cst_182 : f32 to vector<2x32xf32>
    %366 = arith.subf %365, %364 : vector<2x32xf32>
    %367 = math.exp %366 : vector<2x32xf32>
    %cst_183 = arith.constant 1.000000e+00 : f32
    %368 = vector.broadcast %cst_183 : f32 to vector<2x32xf32>
    %369 = arith.addf %368, %367 : vector<2x32xf32>
    %cst_184 = arith.constant 1.000000e+00 : f32
    %370 = vector.broadcast %cst_184 : f32 to vector<2x32xf32>
    %371 = arith.divf %370, %369 : vector<2x32xf32>
    %372 = vector.extract_strided_slice %363 {offsets = [0, 32], sizes = [2, 32], strides = [1, 1]} : vector<2x128xf32> to vector<2x32xf32>
    %cst_185 = arith.constant 0.000000e+00 : f32
    %373 = vector.broadcast %cst_185 : f32 to vector<2x32xf32>
    %374 = arith.subf %373, %372 : vector<2x32xf32>
    %375 = math.exp %374 : vector<2x32xf32>
    %cst_186 = arith.constant 1.000000e+00 : f32
    %376 = vector.broadcast %cst_186 : f32 to vector<2x32xf32>
    %377 = arith.addf %376, %375 : vector<2x32xf32>
    %cst_187 = arith.constant 1.000000e+00 : f32
    %378 = vector.broadcast %cst_187 : f32 to vector<2x32xf32>
    %379 = arith.divf %378, %377 : vector<2x32xf32>
    %380 = vector.extract_strided_slice %363 {offsets = [0, 64], sizes = [2, 32], strides = [1, 1]} : vector<2x128xf32> to vector<2x32xf32>
    %381 = vector.extract_strided_slice %363 {offsets = [0, 96], sizes = [2, 32], strides = [1, 1]} : vector<2x128xf32> to vector<2x32xf32>
    %382 = arith.mulf %371, %381 : vector<2x32xf32>
    %383 = arith.addf %380, %382 : vector<2x32xf32>
    %384 = math.tanh %383 : vector<2x32xf32>
    %cst_188 = arith.constant 1.000000e+00 : f32
    %385 = vector.broadcast %cst_188 : f32 to vector<2x32xf32>
    %386 = arith.subf %385, %379 : vector<2x32xf32>
    %387 = arith.mulf %386, %384 : vector<2x32xf32>
    %388 = arith.mulf %379, %310 : vector<2x32xf32>
    %389 = arith.addf %387, %388 : vector<2x32xf32>
    %cst_189 = arith.constant 0.000000e+00 : f32
    %390 = vector.broadcast %cst_189 : f32 to vector<2x32xf32>
    %391 = arith.maximumf %389, %390 : vector<2x32xf32>
    %c6_190 = arith.constant 6 : index
    %c0_191 = arith.constant 0 : index
    %c0_192 = arith.constant 0 : index
    %392 = vector.load %arg9[%c6_190, %c0_191, %c0_192] : memref<9x32x32xf32, #tpu.memory_space<vmem>>, vector<1x32x32xf32>
    %393 = vector.shape_cast %392 : vector<1x32x32xf32> to vector<32x32xf32>
    %cst_193 = arith.constant dense<0.000000e+00> : vector<2x32xf32>
    %394 = tpu.matmul %391, %393, %cst_193 {dimension_numbers = #tpu.dot_dimension_numbers<[1], [0], [0], [1], [0, 0, 1, 1], [], []>} : vector<2x32xf32>, vector<32x32xf32>, vector<2x32xf32> -> vector<2x32xf32>
    %c12 = arith.constant 12 : index
    %c0_194 = arith.constant 0 : index
    %395 = vector.load %arg12[%c12, %c0_194] : memref<15x32xf32, #tpu.memory_space<vmem>>, vector<1x32xf32>
    %396 = vector.broadcast %395 : vector<1x32xf32> to vector<2x32xf32>
    %397 = arith.addf %394, %396 : vector<2x32xf32>
    %cst_195 = arith.constant 0.999994993 : f32
    %398 = vector.broadcast %cst_195 : f32 to vector<2x32xf32>
    %399 = arith.mulf %397, %398 : vector<2x32xf32>
    %cst_196 = arith.constant 0.000000e+00 : f32
    %400 = vector.broadcast %cst_196 : f32 to vector<2x32xf32>
    %401 = arith.maximumf %399, %400 : vector<2x32xf32>
    %c7_197 = arith.constant 7 : index
    %c0_198 = arith.constant 0 : index
    %c0_199 = arith.constant 0 : index
    %402 = vector.load %arg9[%c7_197, %c0_198, %c0_199] : memref<9x32x32xf32, #tpu.memory_space<vmem>>, vector<1x32x32xf32>
    %403 = vector.shape_cast %402 : vector<1x32x32xf32> to vector<32x32xf32>
    %cst_200 = arith.constant dense<0.000000e+00> : vector<2x32xf32>
    %404 = tpu.matmul %401, %403, %cst_200 {dimension_numbers = #tpu.dot_dimension_numbers<[1], [0], [0], [1], [0, 0, 1, 1], [], []>} : vector<2x32xf32>, vector<32x32xf32>, vector<2x32xf32> -> vector<2x32xf32>
    %c13 = arith.constant 13 : index
    %c0_201 = arith.constant 0 : index
    %405 = vector.load %arg12[%c13, %c0_201] : memref<15x32xf32, #tpu.memory_space<vmem>>, vector<1x32xf32>
    %406 = vector.broadcast %405 : vector<1x32xf32> to vector<2x32xf32>
    %407 = arith.addf %404, %406 : vector<2x32xf32>
    %cst_202 = arith.constant 0.999994993 : f32
    %408 = vector.broadcast %cst_202 : f32 to vector<2x32xf32>
    %409 = arith.mulf %407, %408 : vector<2x32xf32>
    %cst_203 = arith.constant 0.000000e+00 : f32
    %410 = vector.broadcast %cst_203 : f32 to vector<2x32xf32>
    %411 = arith.maximumf %409, %410 : vector<2x32xf32>
    %c8_204 = arith.constant 8 : index
    %c0_205 = arith.constant 0 : index
    %c0_206 = arith.constant 0 : index
    %412 = vector.load %arg9[%c8_204, %c0_205, %c0_206] : memref<9x32x32xf32, #tpu.memory_space<vmem>>, vector<1x32x32xf32>
    %413 = vector.shape_cast %412 : vector<1x32x32xf32> to vector<32x32xf32>
    %cst_207 = arith.constant dense<0.000000e+00> : vector<2x32xf32>
    %414 = tpu.matmul %411, %413, %cst_207 {dimension_numbers = #tpu.dot_dimension_numbers<[1], [0], [0], [1], [0, 0, 1, 1], [], []>} : vector<2x32xf32>, vector<32x32xf32>, vector<2x32xf32> -> vector<2x32xf32>
    %c14 = arith.constant 14 : index
    %c0_208 = arith.constant 0 : index
    %415 = vector.load %arg12[%c14, %c0_208] : memref<15x32xf32, #tpu.memory_space<vmem>>, vector<1x32xf32>
    %416 = vector.broadcast %415 : vector<1x32xf32> to vector<2x32xf32>
    %417 = arith.addf %414, %416 : vector<2x32xf32>
    %418 = vector.extract_strided_slice %417 {offsets = [0, 0], sizes = [2, 4], strides = [1, 1]} : vector<2x32xf32> to vector<2x4xf32>
    %c0_209 = arith.constant 0 : index
    %c0_210 = arith.constant 0 : index
    %419 = vector.load %arg13[%c0_209, %c0_210] : memref<2x4xf32, #tpu.memory_space<vmem>>, vector<2x4xf32>
    tpu.vector_store %arg13[%c0_209, %c0_210], %418 {strides = array<i32>} : memref<2x4xf32, #tpu.memory_space<vmem>>, vector<2x4xf32>,
    return
  }
}

</mosaic_0001>

<bundles_post_ra>
// kernel: attentive_fp_forward.1
= control target key start
LH: loop header
LB: loop body
LE: loop exit
PB: predicated region body
PF: predicated region fallthrough
CT: control target
= control target key end

     0   :  { %18 = vsyncpa [#allocation3], 0  ;;  %s5431_s0 = inlined_call_operand.vmem [shape: f32[12,16], index: 0, kind: input, shape index: {}]   ;;  %s5432_s1 = inlined_call_operand.vmem [shape: f32[24,8], index: 1, kind: input, shape index: {}]   ;;  %s5433_s2 = inlined_call_operand.vmem [shape: s32[24,1], index: 2, kind: input, shape index: {}]   ;;  %s5434_s3 = inlined_call_operand.vmem [shape: s32[24,1], index: 3, kind: input, shape index: {}]   ;;  %s5435_s4 = inlined_call_operand.vmem [shape: s32[1,24], index: 4, kind: input, shape index: {}]   ;;  %s5436_s5 = inlined_call_operand.vmem [shape: s32[12,1], index: 5, kind: input, shape index: {}]   ;;  %s5437_s6 = inlined_call_operand.vmem [shape: s32[1,12], index: 6, kind: input, shape index: {}]   ;;  %s5438_s7 = inlined_call_operand.vmem [shape: f32[16,32], index: 7, kind: input, shape index: {}]   ;;  %s5439_s8 = inlined_call_operand.vmem [shape: f32[8,32], index: 8, kind: input, shape index: {}]   ;;  %s5440_s9 = inlined_call_operand.hbm [shape: f32[9,32,32], index: 9, kind: input, shape index: {}]   ;;  %s5441_s10 = inlined_call_operand.hbm [shape: f32[3,64,128], index: 10, kind: input, shape index: {}]   ;;  %s5442_s11 = inlined_call_operand.vmem [shape: f32[3,128], index: 11, kind: input, shape index: {}]   ;;  %s5443_s12 = inlined_call_operand.vmem [shape: f32[15,32], index: 12, kind: input, shape index: {}]   ;;  %s5444_s13 = inlined_call_operand.hbm [shape: f32[2,4], index: 13, kind: output, shape index: {}]  }
   0x1   :  { %19 = vsyncpa [#allocation6], 0 }
   0x2   :  { %20 = vsyncpa [#allocation4], 0  ;;  %s4692_s25 = smov [#allocation2]   ;;  %s4620_s29 = scalar_lea.hbm %s5440_s9, 4608 }
   0x3   :  { %s44_s26 = sshll.u32 %s4692_s25, 4  ;;  %p4621_p0 = scmp.ne.s32.totalorder %s5440_s9, %s4620_s29  ;;  %s45_s26 = int_to_ptr.vmem [resolvable:$true] %s44_s26 }
   0x4   :  { %p4624_p1 = scmp.lt.u32.totalorder %s4620_s29, %s5440_s9 }
   0x6   :  { %p4626_p2 = pnand %p4624_p1, %p4621_p0 }
   0x8   :  { %4629 = shalt.err (!%p4626_p2)
}
   0x9   :  { %s4630_s17 = scalar_lea.vmem %s45_s26, 4608  ;;  %p4635_p4 = scmp.lt.s32.totalorder %s45_s26, %s45_s26 }
   0xa   :  { %p4631_p3 = scmp.ne.s32.totalorder %s45_s26, %s4630_s17  ;;  %p4636_p5 = scmp.lt.s32.totalorder %s4630_s17, %s4630_s17 }
   0xc   :  { %p4637_p6 = por %p4636_p5, %p4635_p4 }
   0xe   :  { %p4638_p7 = pnand %p4637_p6, %p4631_p3 }
  0x10   :  { %4641 = shalt.err (!%p4638_p7)
}
  0x11   :  { %s4693_s18 = smov 128   ;;  %s4694_s19 = smov 8  }
  0x12   :  { %50 = dma.hbm_to_vmem [thread:$0]  %s5440_s9, 4608, %s45_s26, [#allocation3], %s4693_s18, %s4693_s18, %s4694_s19  }
  0x13   :  { %s4695_s22 = smov [#allocation5]   ;;  %s4642_s27 = scalar_lea.hbm %s5441_s10, 3072 }
  0x14   :  { %s56_s23 = sshll.u32 %s4695_s22, 4  ;;  %p4643_p8 = scmp.ne.s32.totalorder %s5441_s10, %s4642_s27  ;;  %s57_s23 = int_to_ptr.vmem [resolvable:$true] %s56_s23 }
  0x15   :  { %p4646_p9 = scmp.lt.u32.totalorder %s4642_s27, %s5441_s10 }
  0x17   :  { %p4648_p10 = pnand %p4646_p9, %p4643_p8 }
  0x19   :  { %4651 = shalt.err (!%p4648_p10)
}
  0x1a   :  { %s4652_s15 = scalar_lea.vmem %s57_s23, 3072  ;;  %p4657_p12 = scmp.lt.s32.totalorder %s57_s23, %s57_s23 }
  0x1b   :  { %p4653_p11 = scmp.ne.s32.totalorder %s57_s23, %s4652_s15  ;;  %p4658_p13 = scmp.lt.s32.totalorder %s4652_s15, %s4652_s15 }
  0x1d   :  { %p4659_p0 = por %p4658_p13, %p4657_p12 }
  0x1f   :  { %p4660_p1 = pnand %p4659_p0, %p4653_p11 }
  0x21   :  { %4663 = shalt.err (!%p4660_p1)
}
  0x22   :  { %62 = dma.hbm_to_vmem [thread:$0]  %s5441_s10, 3072, %s57_s23, [#allocation6], %s4693_s18, %s4693_s18, %s4694_s19  }
  0x23   :  { %4686 = dma.done.wait [#allocation3], 4608  }
  0x24   :  { %4687 = vsyncadd [#allocation3], 4294962688 }
  0x25   :  { %4688 = dma.done.wait [#allocation6], 3072  }
  0x26   :  { %4689 = vsyncadd [#allocation6], 4294964224  ;;  %v4696_v0 = vmov 0   ;;  %vm162_vm0 = vcmask 130048   ;;  %v155_v1 = vld [vmem:[%s5438_s7] sm:$0xff]  ;;  %v156_v2 = vld [vmem:[%s5438_s7 + $0x8] sm:$0xff]  ;;  %v73_v17 = vlaneseq }
  0x27   :  { %4530 = vset.pattern.permute.xlu0 %v4696_v0  ;;  %4531 = vset.pattern.permute.xlu1 %v4696_v0  ;;  %v153_v3 = vld [vmem:[%s5431_s0] sm:$0xff]  ;;  %v4325_v4 = vpack.c.bf16 %v156_v2, %v155_v1  ;;  %v77_v6 = vld [vmem:[%s5433_s2 + $0x10] sm:$0xff]  ;;  %v76_v7 = vld [vmem:[%s5433_s2 + $0x8] sm:$0xff]  ;;  %v4697_v12 = vmov 0.0|0.0   ;;  %vm4698_vm1 = vmmov 0   ;;  %v4699_v13 = vmov 0.0  }
  0x28   :  { %3944 = vmatprep.mubr.msk.f32.mxu0 %vm162_vm0, %v153_v3  ;;  %v75_v5 = vld [vmem:[%s5433_s2] sm:$0xff]  ;;  %85 = vperm.xlu1 %4531, %v77_v6   ;;  %v154_v9 = vld [vmem:[%s5431_s0 + $0x8] sm:$0xf]  ;;  %v98_v11 = vld [vmem:[%s5434_s3 + $0x10] sm:$0xff]  ;;  %v4841_v22 = vand.u32 127, %v73_v17  ;;  %vm260_vm3 = vcmask 1043456  }
  0x29   :  { %79 = vperm.xlu0 %4530, %v75_v5   ;;  %4326 = vmatprep.subr.bf16.mxu0 %v4325_v4  ;;  %v96_v8 = vld [vmem:[%s5434_s3] sm:$0xff]  ;;  %v97_v10 = vld [vmem:[%s5434_s3 + $0x8] sm:$0xff]  ;;  %vm4700_vm6 = vmmov 1   ;;  %vm250_vm9 = vcmask 97280   ;;  %vm441_vm14 = vcmask 64512   ;;  %v435_v44 = vld [vmem:[#allocation2 + $0x10] sm:$0xff] }
  0x2a   :  { %4328 = vmatpush3.bf16.msra.mxu0 %v4325_v4  ;;  %4329 = vmatprep.subr.bf16.mxu1 %v4697_v12  ;;  %v3654_v16 = vld [vmem:[%s5443_s12] ss:$0 sm:$0xff]  ;;  %vm4848_vm7 = vmpackc.low %vm260_vm3, %vm4700_vm6  ;;  %v434_v41 = vld [vmem:[#allocation2 + $0x8] sm:$0xff]  ;;  %vm531_vm15 = vcmask 261120   ;;  %s4702_s30 = smov 64   ;;  %s4703_s14 = smov 96  }
  0x2b   :  { %4333 = vmatprep.subr.bf16.mxu0 %v4697_v12  ;;  %3951 = vmatprep.mubr.msk.f32.mxu1 %vm4698_vm1, %v4699_v13  ;;  %v440_v35 = vld [vmem:[%s5439_s8] sm:$0xff]  ;;  %v436_v45 = vld [vmem:[#allocation2 + $0x18] sm:$0xff]  ;;  %v438_v46 = vld [vmem:[%s5432_s1 + $0x8] sm:$0xff]  ;;  %s4704_s0 = smov [#allocation7]  }
  0x2c   :  { %100 = vperm.xlu1 %4531, %v96_v8   ;;  %v433_v40 = vld [vmem:[#allocation2] sm:$0xff]  ;;  %v4341_v47 = vpack.c.bf16 %v436_v45, %v435_v44  ;;  %v439_v48 = vld [vmem:[%s5432_s1 + $0x10] sm:$0xff]  ;;  %s3631_s2 = sshll.u32 %s4704_s0, 4  ;;  %s3632_s2 = int_to_ptr.vmem [resolvable:$true] %s3631_s2 }
  0x2d   :  { %82 = vperm.xlu0 %4530, %v76_v7   ;;  %3945 = vmatmul.mubr.msk.f32.vlgmr.msra.gmra.mrb[0].mxu0 %vm162_vm0, %v154_v9  ;;  %v437_v42 = vld [vmem:[%s5432_s1] sm:$0xff]  ;;  %v4338_v43 = vpack.c.bf16 %v434_v41, %v433_v40  ;;  %s4664_s3 = scalar_lea.vmem %s3632_s2, 32  ;;  %p4669_p3 = scmp.lt.s32.totalorder %s3632_s2, %s3632_s2 }
  0x2e   :  { %3964 = vmatprep.mubr.msk.f32.mxu0 %vm4698_vm1, %v4699_v13  ;;  %v3671_v51 = vld [vmem:[%s5443_s12 + $0x2] ss:$0 sm:$0xff]  ;;  %v3672_v7 = vld [vmem:[%s5443_s12 + $0x1] ss:$0 sm:$0xff]  ;;  %p4665_p2 = scmp.ne.s32.totalorder %s3632_s2, %s4664_s3  ;;  %p4670_p4 = scmp.lt.s32.totalorder %s4664_s3, %s4664_s3 }
  0x30   :  { %106 = vperm.xlu1 %4531, %v98_v11   ;;  %p4671_p5 = por %p4670_p4, %p4669_p3 }
  0x31   :  { %103 = vperm.xlu0 %4530, %v97_v10  }
  0x32   :  { %p4672_p6 = pnand %p4671_p5, %p4665_p2 }
  0xa7   :  { %v86_v15 = vpop.permute.xlu1 %85 }
  0xa8   :  { %v80_v14 = vpop.permute.xlu0 %79  ;;  %vm89_vm12 = vcmp.eq.s32.totalorder %v4841_v22, %v86_v15 }
  0xa9   :  { %vm87_vm5 = vcmp.eq.s32.totalorder %v4841_v22, %v80_v14  ;;  %v4893_v38 = vsel %vm89_vm12, 1.0, %v4699_v13 }
  0xaa   :  { %v4856_v31 = vsel %vm87_vm5, 1.0, %v4699_v13 }
  0xab   :  { %v101_v25 = vpop.permute.xlu1 %100 }
  0xac   :  { %v83_v24 = vpop.permute.xlu0 %82  ;;  %vm108_vm8 = vcmp.eq.s32.totalorder %v4841_v22, %v101_v25 }
  0xad   :  { %v4863_v32 = vsel %vm108_vm8, 1.0, %v4699_v13  ;;  %vm88_vm10 = vcmp.eq.s32.totalorder %v4841_v22, %v83_v24 }
  0xae   :  { %v4882_v36 = vsel %vm88_vm10, 1.0, %v4699_v13  ;;  %vm676_vm6 = vcmp.gt.f32.partialorder %v4863_v32, 0.5 }
  0xaf   :  { %v107_v34 = vpop.permute.xlu1 %106 }
  0xb0   :  { %v104_v33 = vpop.permute.xlu0 %103  ;;  %vm110_vm13 = vcmp.eq.s32.totalorder %v4841_v22, %v107_v34 }
  0xb1   :  { %vm109_vm11 = vcmp.eq.s32.totalorder %v4841_v22, %v104_v33  ;;  %v4896_v39 = vsel %vm110_vm13, 1.0, %v4699_v13  ;;  %vm714_vm13 = vcmask 195584  }
  0xb2   :  { %v4885_v37 = vsel %vm109_vm11, 1.0, %v4699_v13  ;;  %vm678_vm11 = vcmp.gt.f32.partialorder %v4896_v39, 0.5 }
  0xb3   :  { %vm677_vm8 = vcmp.gt.f32.partialorder %v4885_v37, 0.5 }
 0x100   :  { %v3946_v18 = vpop.f32.mrb[0].mxu0 }
 0x101   :  { %v241_v19 = vadd.f32 %v3946_v18, %v3654_v16  ;;  %v235_v20 = vpop.f32.mrb[1].mxu0 }
 0x102   :  { %v236_v21 = vadd.f32 %v3654_v16, %v235_v20 }
 0x103   :  { %vm245_vm2 = vcmp.gt.f32.partialorder %v241_v19, 0.0  ;;  %v247_v23 = vmul.f32 0.01, %v241_v19 }
 0x104   :  { %vm244_vm4 = vcmp.gt.f32.partialorder %v236_v21, 0.0  ;;  %v246_v26 = vmul.f32 0.01, %v236_v21 }
 0x105   :  { %v4843_v27 = vsel %vm245_vm2, %v241_v19, %v247_v23 }
 0x106   :  { %v4846_v28 = vsel %vm244_vm4, %v236_v21, %v246_v26 }
 0x107   :  { %v4330_v30 = vpack.c.bf16 %v4843_v27, %v4846_v28 }
 0x109   :  { %4332 = vmatpush3.bf16.msk.msra.mxu1 %vm4848_vm7, %v4330_v30  ;;  %4336 = vmatpush3.bf16.msk.msra.mxu0 %vm4848_vm7, %v4330_v30 }
 0x10a   :  { %3973 = vmatprep.subr.mxu1 %v4699_v13 }
 0x10c   :  { %3952 = vmatmul.mubr.msk.f32.vlgmr.msra.gmra.mrb[0].mxu1 %vm250_vm9, %v4856_v31  ;;  %3965 = vmatmul.mubr.msk.f32.vlgmr.msra.gmra.mrb[2].mxu0 %vm250_vm9, %v4863_v32 }
 0x10d   :  { %3954 = vmatprep.mubr.msk.f32.mxu1 %vm4698_vm1, %v4699_v13  ;;  %3967 = vmatprep.mubr.msk.f32.mxu0 %vm4698_vm1, %v4699_v13 }
 0x10e   :  { %3974 = vmatpush3.msra.mxu1 %v440_v35 }
 0x10f   :  { %4337 = vmatprep.subr.bf16.mxu1 %v4697_v12 }
 0x110   :  { %3955 = vmatmul.mubr.msk.f32.gmra.mrb[2].mxu1 %vm250_vm9, %v4882_v36  ;;  %3968 = vmatmul.mubr.msk.f32.gmra.mrb[4].mxu0 %vm250_vm9, %v4885_v37 }
 0x111   :  { %3957 = vmatprep.mubr.msk.f32.mxu1 %vm4698_vm1, %v4699_v13  ;;  %3970 = vmatprep.mubr.msk.f32.mxu0 %vm4698_vm1, %v4699_v13 }
 0x114   :  { %3958 = vmatmul.mubr.msk.f32.gmra.mrb[4].mxu1 %vm250_vm9, %v4893_v38  ;;  %3971 = vmatmul.mubr.msk.f32.gmra.mrb[6].mxu0 %vm250_vm9, %v4896_v39 }
 0x115   :  { %3975 = vmatprep.mubr.msk.f32.mxu1 %vm4698_vm1, %v4699_v13 }
 0x118   :  { %3976 = vmatmul.mubr.msk.f32.vlgmr.msra.gmra.mrb[6].mxu1 %vm441_vm14, %v437_v42 }
 0x119   :  { %3978 = vmatprep.mubr.msk.f32.mxu1 %vm4698_vm1, %v4699_v13  ;;  %4339 = vmatpush3.bf16.msra.mxu1 %v4338_v43 }
 0x11a   :  { %4340 = vmatprep.subr.bf16.mxu1 %v4697_v12 }
 0x11c   :  { %3979 = vmatmul.mubr.msk.f32.gmra.mrb[8].mxu1 %vm441_vm14, %v438_v46 }
 0x11d   :  { %3981 = vmatprep.mubr.msk.f32.mxu1 %vm4698_vm1, %v4699_v13  ;;  %4342 = vmatpush3.bf16.msra.mxu1 %v4341_v47 }
 0x120   :  { %3982 = vmatmul.mubr.msk.f32.gmra.mrb[10].mxu1 %vm441_vm14, %v439_v48 }
 0x121   :  { %3992 = vmatprep.mubr.msk.f32.mxu1 %vm4698_vm1, %v4699_v13 }
 0x1df   :  { %v4924_v49 = vpop.f32.mrb[0].mxu1  ;;  %v419_v50 = vpop.f32.mrb[2].mxu0 }
 0x1e0   :  { %v3953_v52 = vpop.f32.mrb[1].mxu1  ;;  %3993 = vmatmul.mubr.msk.f32.vlgmr.msra.gmra.mrb[6].mxu1 %vm531_vm15, %v4924_v49  ;;  %v636_v53 = vmul.f32 %v3671_v51, %v419_v50  ;;  %v3966_v54 = vpop.f32.mrb[3].mxu0 }
 0x1e1   :  { %3995 = vmatprep.mubr.msk.f32.mxu1 %vm4698_vm1, %v4699_v13 }
 0x1e2   :  { %v639_v55 = vsel %vm531_vm15, %v636_v53, 0.0 }
 0x1e3   :  { %v4934_v56 = vpop.f32.mrb[2].mxu1  ;;  %v424_v57 = vpop.f32.mrb[4].mxu0  ;;  %640 = vadd.xlane.f32.xlu0 %v639_v55 }
 0x1e4   :  { %v637_v58 = vmul.f32 %v3671_v51, %v424_v57  ;;  %v3956_v59 = vpop.f32.mrb[3].mxu1  ;;  %v3969_v60 = vpop.f32.mrb[5].mxu0  ;;  %3996 = vmatmul.mubr.msk.f32.gmra.mrb[8].mxu1 %vm531_vm15, %v4934_v56 }
 0x1e5   :  { %3998 = vmatprep.mubr.msk.f32.mxu1 %vm4698_vm1, %v4699_v13 }
 0x1e6   :  { %v642_v61 = vsel %vm531_vm15, %v637_v58, 0.0 }
 0x1e7   :  { %v4941_v62 = vpop.f32.mrb[4].mxu1  ;;  %643 = vadd.xlane.f32.xlu1 %v642_v61  ;;  %v429_v63 = vpop.f32.mrb[6].mxu0 }
 0x1e8   :  { %v638_v0 = vmul.f32 %v3671_v51, %v429_v63  ;;  %v3959_v1 = vpop.f32.mrb[5].mxu1  ;;  %v3972_v2 = vpop.f32.mrb[7].mxu0  ;;  %3999 = vmatmul.mubr.msk.f32.gmra.mrb[10].mxu1 %vm531_vm15, %v4941_v62 }
 0x1ea   :  { %v645_v3 = vsel %vm531_vm15, %v638_v0, 0.0 }
 0x1eb   :  { %646 = vadd.xlane.f32.xlu1 %v645_v3 }
 0x270   :  { %v641_v30 = vpop.xlane.xlu0 %640 }
 0x274   :  { %v644_v35 = vpop.xlane.xlu1 %643 }
 0x278   :  { %v647_v45 = vpop.xlane.xlu1 %646 }
 0x2b3   :  { %v607_v4 = vpop.f32.mrb[6].mxu1 }
 0x2b4   :  { %vm621_vm0 = vcmp.gt.f32.partialorder %v607_v4, 0.0  ;;  %v624_v5 = vmul.f32 0.01, %v607_v4  ;;  %v3994_v6 = vpop.f32.mrb[7].mxu1 }
 0x2b6   :  { %v627_v8 = vsel %vm621_vm0, %v607_v4, %v624_v5 }
 0x2b7   :  { %v612_v9 = vpop.f32.mrb[8].mxu1  ;;  %v652_v10 = vmul.f32 %v3672_v7, %v627_v8 }
 0x2b8   :  { %vm622_vm2 = vcmp.gt.f32.partialorder %v612_v9, 0.0  ;;  %v625_v11 = vmul.f32 0.01, %v612_v9  ;;  %v3997_v14 = vpop.f32.mrb[9].mxu1 }
 0x2b9   :  { %v655_v15 = vsel %vm531_vm15, %v652_v10, 0.0  ;;  %v4971_v10 = vshrl.u32 %v73_v17, 7 }
 0x2ba   :  { %656 = vadd.xlane.f32.xlu0 %v655_v15  ;;  %v628_v16 = vsel %vm622_vm2, %v612_v9, %v625_v11  ;;  %v3647_v11 = vld [vmem:[%s5435_s4] ss:$0 sm:$0xff]  ;;  %s4701_s4 = smov 32  }
 0x2bb   :  { %v617_v18 = vpop.f32.mrb[10].mxu1  ;;  %v653_v19 = vmul.f32 %v3672_v7, %v628_v16  ;;  %vm125_vm12 = vcmp.eq.s32.totalorder %v4971_v10, %v3647_v11 }
 0x2bc   :  { %vm623_vm3 = vcmp.gt.f32.partialorder %v617_v18, 0.0  ;;  %v626_v20 = vmul.f32 0.01, %v617_v18  ;;  %v4000_v21 = vpop.f32.mrb[11].mxu1  ;;  %v4978_v14 = vsel %vm125_vm12, 1.0, %v4699_v13  ;;  %vm2324_vm12 = vcmask 15360  }
 0x2bd   :  { %v659_v23 = vsel %vm531_vm15, %v653_v19, 0.0  ;;  %4007 = vmatprep.mubr.msk.f32.mxu0 %vm714_vm13, %v4978_v14  ;;  %4046 = vmatprep.mubr.msk.f32.mxu1 %vm714_vm13, %v4978_v14 }
 0x2be   :  { %660 = vadd.xlane.f32.xlu0 %v659_v23  ;;  %v629_v24 = vsel %vm623_vm3, %v617_v18, %v626_v20  ;;  %vm1102_vm3 = vcmask 523264  }
 0x2bf   :  { %v654_v25 = vmul.f32 %v3672_v7, %v629_v24 }
 0x2c1   :  { %v663_v26 = vsel %vm531_vm15, %v654_v25, 0.0 }
 0x2c2   :  { %664 = vadd.xlane.f32.xlu0 %v663_v26  ;;  %v119_v26 = vadd.s32 8, %v4971_v10 }
 0x2c4   :  { %vm126_vm14 = vcmp.eq.s32.totalorder %v119_v26, %v3647_v11  ;;  %v1087_v26 = vld [vmem:[#allocation5 + $0x38] sm:$0xff] }
 0x347   :  { %v657_v33 = vpop.xlane.xlu0 %656 }
 0x348   :  { %v658_v34 = vadd.f32 %v657_v33, %v641_v30 }
 0x34a   :  { %v670_v40 = vmul.f32 0.01, %v658_v34  ;;  %vm667_vm4 = vcmp.gt.f32.partialorder %v658_v34, 0.0 }
 0x34b   :  { %v661_v41 = vpop.xlane.xlu0 %660 }
 0x34c   :  { %v662_v42 = vadd.f32 %v661_v41, %v644_v35  ;;  %v673_v43 = vsel %vm667_vm4, %v658_v34, %v670_v40  ;;  %v4986_v35 = vsel %vm126_vm14, 1.0, %v4699_v13  ;;  %vm2331_vm14 = vcmask 1041408  }
 0x34d   :  { %v679_v50 = vsel %vm676_vm6, %v673_v43, -1e+30 }
 0x34e   :  { %vm668_vm5 = vcmp.gt.f32.partialorder %v662_v42, 0.0  ;;  %v671_v44 = vmul.f32 0.01, %v662_v42  ;;  %v682_v54 = vsel %vm250_vm9, %v679_v50, -inf }
 0x34f   :  { %v665_v46 = vpop.xlane.xlu0 %664 }
 0x350   :  { %v674_v47 = vsel %vm668_vm5, %v662_v42, %v671_v44  ;;  %v666_v48 = vadd.f32 %v665_v46, %v647_v45  ;;  %v886_v42 = vld [vmem:[#allocation2 + $0x20] sm:$0xff]  ;;  %v888_v46 = vld [vmem:[#allocation2 + $0x30] sm:$0xff] }
 0x351   :  { %v680_v51 = vsel %vm677_vm8, %v674_v47, -1e+30 }
 0x352   :  { %v683_v52 = vsel %vm250_vm9, %v680_v51, -inf  ;;  %vm669_vm10 = vcmp.gt.f32.partialorder %v666_v48, 0.0  ;;  %v672_v53 = vmul.f32 0.01, %v666_v48 }
 0x353   :  { %v685_v57 = vmax.f32 %v682_v54, %v683_v52 }
 0x354   :  { %v675_v55 = vsel %vm669_vm10, %v666_v48, %v672_v53 }
 0x355   :  { %v681_v58 = vsel %vm678_vm11, %v675_v55, -1e+30 }
 0x356   :  { %v684_v59 = vsel %vm250_vm9, %v681_v58, -inf }
 0x357   :  { %v686_v60 = vmax.f32 %v685_v57, %v684_v59 }
 0x359   :  { %v687_v61 = vrot.slane %v686_v60, 4 }
 0x35b   :  { %v688_v63 = vmax.f32 %v686_v60, %v687_v61 }
 0x35d   :  { %v689_v0 = vrot.slane %v688_v63, 2 }
 0x35f   :  { %v690_v1 = vmax.f32 %v688_v63, %v689_v0 }
 0x361   :  { %v691_v2 = vrot.slane %v690_v1, 1 }
 0x363   :  { %v692_v3 = vmax.f32 %v690_v1, %v691_v2 }
 0x365   :  { %v694_v4 = vmul.f32 %v4885_v37, %v692_v3  ;;  %v693_v5 = vmul.f32 %v4863_v32, %v692_v3  ;;  %v695_v8 = vmul.f32 %v4896_v39, %v692_v3 }
 0x367   :  { %v699_v6 = vsel %vm250_vm9, %v694_v4, 0.0  ;;  %v696_v7 = vsel %vm250_vm9, %v693_v5, 0.0  ;;  %v702_v9 = vsel %vm250_vm9, %v695_v8, 0.0 }
 0x368   :  { %700 = vadd.xlane.f32.xlu0 %v699_v6  ;;  %697 = vadd.xlane.f32.xlu1 %v696_v7 }
 0x36c   :  { %703 = vadd.xlane.f32.xlu1 %v702_v9 }
 0x3f5   :  { %v701_v15 = vpop.xlane.xlu0 %700  ;;  %v698_v16 = vpop.xlane.xlu1 %697 }
 0x3f6   :  { %v706_v17 = vsub.f32 %v674_v47, %v701_v15  ;;  %v705_v18 = vsub.f32 %v673_v43, %v698_v16  ;;  %v887_v43 = vld [vmem:[#allocation2 + $0x28] sm:$0xff]  ;;  %v889_v47 = vld [vmem:[#allocation2 + $0x38] sm:$0xff] }
 0x3f7   :  { %v4352_v45 = vpack.c.bf16 %v887_v43, %v886_v42  ;;  %v4355_v48 = vpack.c.bf16 %v889_v47, %v888_v46 }
 0x3f8   :  { %v710_v19 = vmul.f32 1.442695, %v706_v17  ;;  %v708_v20 = vmul.f32 1.442695, %v705_v18  ;;  %v1081_v17 = vld [vmem:[#allocation5 + $0x8] sm:$0xff] }
 0x3f9   :  { %v704_v21 = vpop.xlane.xlu1 %703 }
 0x3fa   :  { %4532 = vpow2.f32 %v710_v19  ;;  %v707_v23 = vsub.f32 %v675_v55, %v704_v21  ;;  %v1083_v19 = vld [vmem:[#allocation5 + $0x18] sm:$0xff]  ;;  %v1084_v21 = vld [vmem:[#allocation5 + $0x20] sm:$0xff] }
 0x3fb   :  { %4534 = vpow2.f32 %v708_v20 }
 0x3fc   :  { %v712_v24 = vmul.f32 1.442695, %v707_v23  ;;  %v1085_v23 = vld [vmem:[#allocation5 + $0x28] sm:$0xff] }
 0x3fe   :  { %4536 = vpow2.f32 %v712_v24  ;;  %v4369_v24 = vpack.c.bf16 %v1085_v23, %v1084_v21  ;;  %v1240_v23 = vld [vmem:[#allocation2 + $0x58] sm:$0xff] }
 0x404   :  { %v4533_v25 = vpop.eup %4532 }
 0x405   :  { %v4535_v30 = vpop.eup %4534 }
 0x406   :  { %v4343_v33 = vpack.c.bf16 %v4533_v25, %v4535_v30 }
 0x408   :  { %v4537_v34 = vpop.eup %4536  ;;  %4344 = vmatprep.subr.bf16.mxu0 %v4343_v33 }
 0x409   :  { %4346 = vmatpush3.bf16.msra.mxu0 %v4343_v33  ;;  %v3682_v33 = vld [vmem:[%s5443_s12 + $0x3] ss:$0 sm:$0xff] }
 0x40a   :  { %4005 = vmatprep.subr.mxu0 %v4537_v34 }
 0x40d   :  { %4006 = vmatpush3.msra.mxu0 %v4537_v34 }
 0x40e   :  { %4008 = vmatmul.mubr.msk.f32.vlgmr.msra.gmra.mrb[8].mxu0 %vm714_vm13, %v4986_v35  ;;  %4347 = vmatprep.subr.bf16.mxu0 %v4697_v12 }
 0x40f   :  { %4014 = vmatprep.mubr.msk.f32.mxu0 %vm4698_vm1, %v4699_v13 }
 0x4e1   :  { %v4009_v40 = vpop.f32.mrb[8].mxu0 }
 0x4e2   :  { %v787_v41 = vpop.f32.mrb[9].mxu0 }
 0x4e3   :  { %v4348_v44 = vpack.c.bf16 %v4009_v40, %v787_v41 }
 0x4e5   :  { %4350 = vmatpush3.bf16.msk.msra.mxu0 %vm4848_vm7, %v4348_v44 }
 0x4e6   :  { %4351 = vmatprep.subr.bf16.mxu0 %v4697_v12 }
 0x4e8   :  { %4015 = vmatmul.mubr.msk.f32.vlgmr.msra.gmra.mrb[10].mxu0 %vm250_vm9, %v4863_v32 }
 0x4e9   :  { %4017 = vmatprep.mubr.msk.f32.mxu0 %vm4698_vm1, %v4699_v13  ;;  %4353 = vmatpush3.bf16.msra.mxu0 %v4352_v45 }
 0x4ea   :  { %4354 = vmatprep.subr.bf16.mxu0 %v4697_v12 }
 0x4ec   :  { %4018 = vmatmul.mubr.msk.f32.gmra.mrb[12].mxu0 %vm250_vm9, %v4885_v37 }
 0x4ed   :  { %4020 = vmatprep.mubr.msk.f32.mxu0 %vm4698_vm1, %v4699_v13  ;;  %4356 = vmatpush3.bf16.msra.mxu0 %v4355_v48 }
 0x4f0   :  { %4021 = vmatmul.mubr.msk.f32.gmra.mrb[14].mxu0 %vm250_vm9, %v4896_v39 }
 0x4f1   :  { %4031 = vmatprep.mubr.msk.f32.mxu0 %vm4698_vm1, %v4699_v13 }
 0x4f4   :  { %4032 = vmatmul.mubr.msk.f32.vlgmr.msra.gmra.mrb[16].mxu0 %vm531_vm15, %v4924_v49 }
 0x4f5   :  { %4034 = vmatprep.mubr.msk.f32.mxu0 %vm4698_vm1, %v4699_v13 }
 0x4f8   :  { %4035 = vmatmul.mubr.msk.f32.gmra.mrb[18].mxu0 %vm531_vm15, %v4934_v56 }
 0x4f9   :  { %4037 = vmatprep.mubr.msk.f32.mxu0 %vm4698_vm1, %v4699_v13 }
 0x4fc   :  { %4038 = vmatmul.mubr.msk.f32.gmra.mrb[20].mxu0 %vm531_vm15, %v4941_v62 }
 0x5bb   :  { %v865_v50 = vpop.f32.mrb[10].mxu0 }
 0x5bc   :  { %v866_v51 = vadd.f32 1e-16, %v865_v50  ;;  %v4016_v52 = vpop.f32.mrb[11].mxu0 }
 0x5be   :  { %4538 = vrcp.f32 %v866_v51 }
 0x5bf   :  { %v870_v53 = vpop.f32.mrb[12].mxu0 }
 0x5c0   :  { %v871_v54 = vadd.f32 1e-16, %v870_v53  ;;  %v4019_v55 = vpop.f32.mrb[13].mxu0 }
 0x5c2   :  { %4540 = vrcp.f32 %v871_v54 }
 0x5c3   :  { %v875_v49 = vpop.f32.mrb[14].mxu0 }
 0x5c4   :  { %v876_v57 = vadd.f32 1e-16, %v875_v49  ;;  %v4022_v58 = vpop.f32.mrb[15].mxu0 }
 0x5c5   :  { %v3687_v58 = vld [vmem:[%s5442_s11] ss:$0 sm:$0xff] }
 0x5c6   :  { %4542 = vrcp.f32 %v876_v57 }
 0x5c7   :  { %v956_v59 = vpop.f32.mrb[16].mxu0 }
 0x5c8   :  { %v4539_v56 = vpop.eup %4538  ;;  %v4033_v60 = vpop.f32.mrb[17].mxu0 }
 0x5c9   :  { %v882_v61 = vmul.f32 %v4539_v56, %v4535_v30 }
 0x5cb   :  { %972 = vperm.xlu0 %4530, %v882_v61   ;;  %v961_v63 = vpop.f32.mrb[18].mxu0 }
 0x5cc   :  { %v4541_v0 = vpop.eup %4540  ;;  %v4036_v62 = vpop.f32.mrb[19].mxu0 }
 0x5cd   :  { %v883_v1 = vmul.f32 %v4541_v0, %v4533_v25  ;;  %v1086_v25 = vld [vmem:[#allocation5 + $0x30] sm:$0xff] }
 0x5ce   :  { %v4373_v30 = vpack.c.bf16 %v1087_v26, %v1086_v25 }
 0x5cf   :  { %1090 = vrot.lane.b32.xlu0 %v4846_v28, %s4701_s4  ;;  %977 = vperm.xlu1 %4531, %v883_v1   ;;  %v966_v2 = vpop.f32.mrb[20].mxu0  ;;  %v1080_v28 = vld [vmem:[#allocation5] sm:$0xff] }
 0x5d0   :  { %v4543_v3 = vpop.eup %4542  ;;  %v4039_v4 = vpop.f32.mrb[21].mxu0  ;;  %v4361_v18 = vpack.c.bf16 %v1081_v17, %v1080_v28 }
 0x5d1   :  { %v884_v5 = vmul.f32 %v4543_v3, %v4537_v34 }
 0x5d2   :  { %4362 = vmatprep.subr.bf16.mxu0 %v4361_v18 }
 0x5d3   :  { %982 = vperm.xlu1 %4531, %v884_v5   ;;  %4364 = vmatpush3.bf16.msra.mxu0 %v4361_v18 }
 0x5d7   :  { %1092 = vrot.lane.b32.xlu1 %v4843_v27, %s4701_s4  ;;  %v1082_v27 = vld [vmem:[#allocation5 + $0x10] sm:$0xff] }
 0x5d8   :  { %v4365_v20 = vpack.c.bf16 %v1083_v19, %v1082_v27  ;;  %v1237_v27 = vld [vmem:[#allocation2 + $0x40] sm:$0xff]  ;;  %v1238_v19 = vld [vmem:[#allocation2 + $0x48] sm:$0xff] }
 0x5d9   :  { %v4377_v21 = vpack.c.bf16 %v1238_v19, %v1237_v27 }
 0x5da   :  { %4366 = vmatprep.subr.bf16.mxu0 %v4365_v20 }
 0x5db   :  { %4368 = vmatpush3.bf16.msra.mxu0 %v4365_v20  ;;  %v1239_v20 = vld [vmem:[#allocation2 + $0x50] sm:$0xff] }
 0x5dc   :  { %4370 = vmatprep.subr.bf16.mxu0 %v4369_v24 }
 0x5df   :  { %4372 = vmatpush3.bf16.msra.mxu0 %v4369_v24  ;;  %v4381_v24 = vpack.c.bf16 %v1240_v23, %v1239_v20 }
 0x5e0   :  { %4374 = vmatprep.subr.bf16.mxu0 %v4373_v30 }
 0x5e3   :  { %4376 = vmatpush3.bf16.msra.mxu0 %v4373_v30  ;;  %v1332_v30 = vld [vmem:[#allocation2 + $0x60] sm:$0xff] }
 0x5e4   :  { %4393 = vmatprep.subr.bf16.mxu0 %v4697_v12 }
 0x64a   :  { %v973_v6 = vpop.permute.xlu0 %972 }
 0x64b   :  { %v985_v8 = vmul.f32 %v973_v6, %v956_v59 }
 0x64e   :  { %v978_v7 = vpop.permute.xlu1 %977  ;;  %v5029_v53 = vpop.permute.xlu0 %1090 }
 0x64f   :  { %v986_v9 = vmul.f32 %v978_v7, %v961_v63 }
 0x651   :  { %v4357_v11 = vpack.c.bf16 %v986_v9, %v985_v8 }
 0x652   :  { %v983_v15 = vpop.permute.xlu1 %982 }
 0x653   :  { %v987_v16 = vmul.f32 %v983_v15, %v966_v2  ;;  %4358 = vmatprep.subr.bf16.mxu1 %v4357_v11 }
 0x654   :  { %4360 = vmatpush3.bf16.msra.mxu1 %v4357_v11 }
 0x655   :  { %4044 = vmatprep.subr.mxu1 %v987_v16 }
 0x656   :  { %v1093_v55 = vpop.permute.xlu1 %1092 }
 0x658   :  { %4045 = vmatpush3.msra.mxu1 %v987_v16 }
 0x659   :  { %4047 = vmatmul.mubr.msk.f32.vlgmr.msra.gmra.mrb[12].mxu1 %vm714_vm13, %v4986_v35  ;;  %4378 = vmatprep.subr.bf16.mxu1 %v4377_v21 }
 0x65a   :  { %4380 = vmatpush3.bf16.msra.mxu1 %v4377_v21 }
 0x65b   :  { %4382 = vmatprep.subr.bf16.mxu1 %v4381_v24 }
 0x65e   :  { %4384 = vmatpush3.bf16.msra.mxu1 %v4381_v24 }
 0x72c   :  { %v4048_v34 = vpop.f32.mrb[12].mxu1 }
 0x72d   :  { %v1065_v40 = vadd.f32 %v4048_v34, %v3682_v33  ;;  %v1059_v41 = vpop.f32.mrb[13].mxu1 }
 0x72e   :  { %v1060_v42 = vadd.f32 %v3682_v33, %v1059_v41  ;;  %v1333_v33 = vld [vmem:[#allocation2 + $0x68] sm:$0xff] }
 0x72f   :  { %v1071_v43 = vmin.f32 %v1065_v40, 0.0  ;;  %vm1069_vm0 = vcmp.gt.f32.partialorder %v1065_v40, 0.0  ;;  %v4385_v34 = vpack.c.bf16 %v1333_v33, %v1332_v30 }
 0x730   :  { %v1070_v44 = vmin.f32 %v1060_v42, 0.0  ;;  %vm1068_vm2 = vcmp.gt.f32.partialorder %v1060_v42, 0.0 }
 0x731   :  { %v1074_v45 = vmul.f32 1.442695, %v1071_v43  ;;  %4386 = vmatprep.subr.bf16.mxu1 %v4385_v34 }
 0x732   :  { %v1072_v46 = vmul.f32 1.442695, %v1070_v44 }
 0x733   :  { %4544 = vpow2.f32 %v1074_v45 }
 0x734   :  { %4546 = vpow2.f32 %v1072_v46 }
 0x73d   :  { %v4545_v47 = vpop.eup %4544 }
 0x73e   :  { %v4547_v48 = vpop.eup %4546  ;;  %v3686_v50 = vadd.f32 -1.0, %v4545_v47 }
 0x73f   :  { %v3685_v51 = vadd.f32 -1.0, %v4547_v48 }
 0x740   :  { %v1079_v52 = vsel %vm1069_vm0, %v1065_v40, %v3686_v50 }
 0x741   :  { %v1078_v54 = vsel %vm1068_vm2, %v1060_v42, %v3685_v51  ;;  %v1097_v57 = vsel %vm531_vm15, %v1079_v52, %v1093_v55 }
 0x742   :  { %v1096_v49 = vsel %vm531_vm15, %v1078_v54, %v5029_v53  ;;  %v1334_v54 = vld [vmem:[#allocation2 + $0x70] sm:$0xff] }
 0x743   :  { %4065 = vmatprep.mubr.msk.f32.mxu0 %vm1102_vm3, %v1096_v49  ;;  %v1335_v49 = vld [vmem:[#allocation2 + $0x78] sm:$0xff] }
 0x744   :  { %4066 = vmatmul.mubr.msk.f32.vlgmr.msra.gmra.mrb[22].mxu0 %vm1102_vm3, %v1097_v57  ;;  %v4389_v57 = vpack.c.bf16 %v1335_v49, %v1334_v54 }
 0x745   :  { %4094 = vmatprep.mubr.msk.f32.mxu0 %vm4698_vm1, %v4699_v13 }
 0x817   :  { %v4067_v59 = vpop.f32.mrb[22].mxu0 }
 0x818   :  { %v1181_v56 = vadd.f32 %v4067_v59, %v3687_v58  ;;  %v1175_v60 = vpop.f32.mrb[23].mxu0 }
 0x819   :  { %v1176_v61 = vadd.f32 %v3687_v58, %v1175_v60 }
 0x81a   :  { %1200 = vrot.lane.b32.xlu1 %v1181_v56, %s4701_s4  ;;  %v1185_v63 = vsub.f32 0.0, %v1181_v56 }
 0x81b   :  { %1198 = vrot.lane.b32.xlu0 %v1176_v61, %s4701_s4  ;;  %v1184_v0 = vsub.f32 0.0, %v1176_v61 }
 0x81c   :  { %v1188_v62 = vmul.f32 1.442695, %v1185_v63 }
 0x81d   :  { %v1186_v1 = vmul.f32 1.442695, %v1184_v0  ;;  %v3693_v0 = vld [vmem:[%s5443_s12 + $0x5] ss:$0 sm:$0xff] }
 0x81e   :  { %4548 = vpow2.f32 %v1188_v62 }
 0x81f   :  { %4550 = vpow2.f32 %v1186_v1 }
 0x828   :  { %v4549_v2 = vpop.eup %4548 }
 0x829   :  { %v4551_v3 = vpop.eup %4550  ;;  %v1191_v4 = vadd.f32 1.0, %v4549_v2 }
 0x82a   :  { %v1190_v5 = vadd.f32 1.0, %v4551_v3 }
 0x82b   :  { %4552 = vrcp.f32 %v1191_v4 }
 0x82c   :  { %4554 = vrcp.f32 %v1190_v5 }
 0x835   :  { %v4553_v6 = vpop.eup %4552 }
 0x836   :  { %v4555_v8 = vpop.eup %4554  ;;  %v1219_v40 = vsub.f32 1.0, %v4553_v6  ;;  %v1231_v43 = vmul.f32 %v4553_v6, %v1093_v55 }
 0x837   :  { %v1218_v42 = vsub.f32 1.0, %v4555_v8  ;;  %v1230_v46 = vmul.f32 %v4555_v8, %v5029_v53  ;;  %v3690_v53 = vld [vmem:[%s5443_s12 + $0x4] ss:$0 sm:$0xff] }
 0x88c   :  { %v1201_v7 = vpop.permute.xlu1 %1200 }
 0x88d   :  { %v1205_v9 = vmul.f32 %v4553_v6, %v1201_v7  ;;  %v1199_v11 = vpop.permute.xlu0 %1198 }
 0x88e   :  { %v1204_v15 = vmul.f32 %v4555_v8, %v1199_v11 }
 0x88f   :  { %1210 = vrot.lane.b32.xlu1 %v1205_v9, %s4702_s30 }
 0x890   :  { %1208 = vrot.lane.b32.xlu0 %v1204_v15, %s4702_s30 }
 0x901   :  { %v1211_v16 = vpop.permute.xlu1 %1210 }
 0x902   :  { %v1215_v28 = vadd.f32 %v1211_v16, %v1181_v56  ;;  %v1209_v17 = vpop.permute.xlu0 %1208  ;;  %v3704_v16 = vld [vmem:[%s5443_s12 + $0x6] ss:$0 sm:$0xff] }
 0x903   :  { %v1214_v18 = vadd.f32 %v1209_v17, %v1176_v61 }
 0x904   :  { %4556 = vtanh.f32 %v1215_v28 }
 0x905   :  { %4558 = vtanh.f32 %v1214_v18 }
 0x90e   :  { %v4557_v25 = vpop.eup %4556 }
 0x90f   :  { %v4559_v26 = vpop.eup %4558  ;;  %1224 = vrot.lane.b32.xlu1 %v4557_v25, %s4703_s14 }
 0x910   :  { %1222 = vrot.lane.b32.xlu0 %v4559_v26, %s4703_s14 }
 0x981   :  { %v1225_v41 = vpop.permute.xlu1 %1224 }
 0x982   :  { %v1229_v44 = vmul.f32 %v1225_v41, %v1219_v40  ;;  %v1223_v45 = vpop.permute.xlu0 %1222 }
 0x983   :  { %v1228_v47 = vmul.f32 %v1223_v45, %v1218_v42 }
 0x984   :  { %v1233_v48 = vadd.f32 %v1231_v43, %v1229_v44 }
 0x985   :  { %v1232_v50 = vadd.f32 %v1230_v46, %v1228_v47 }
 0x986   :  { %v5048_v51 = vmax.f32 %v1233_v48, 0.0 }
 0x987   :  { %v5050_v52 = vmax.f32 %v1232_v50, 0.0 }
 0x988   :  { %1250 = vrot.lane.b32.xlu1 %v5048_v51, %s4703_s14 }
 0x989   :  { %1248 = vrot.lane.b32.xlu0 %v5050_v52, %s4703_s14 }
 0x9fa   :  { %v1251_v58 = vpop.permute.xlu1 %1250 }
 0x9fb   :  { %v1249_v55 = vpop.permute.xlu0 %1248 }
 0x9fc   :  { %4076 = vmatprep.mubr.msk.f32.mxu1 %vm531_vm15, %v1249_v55 }
 0x9fd   :  { %4077 = vmatmul.mubr.msk.f32.vlgmr.msra.gmra.mrb[14].mxu1 %vm531_vm15, %v1251_v58 }
 0x9fe   :  { %4388 = vmatpush3.bf16.msra.mxu1 %v4385_v34  ;;  %4087 = vmatprep.mubr.msk.f32.mxu1 %vm531_vm15, %v1249_v55 }
 0x9ff   :  { %4390 = vmatprep.subr.bf16.mxu1 %v4389_v57 }
 0xa02   :  { %4392 = vmatpush3.bf16.msra.mxu1 %v4389_v57 }
 0xa03   :  { %4397 = vmatprep.subr.bf16.mxu1 %v4697_v12 }
 0xa05   :  { %4088 = vmatmul.mubr.msk.f32.vlgmr.msra.gmra.mrb[16].mxu1 %vm531_vm15, %v1251_v58 }
 0xa06   :  { %4107 = vmatprep.mubr.msk.f32.mxu1 %vm4698_vm1, %v4699_v13 }
 0xad0   :  { %v4078_v59 = vpop.f32.mrb[14].mxu1 }
 0xad1   :  { %v1328_v56 = vadd.f32 %v4078_v59, %v3690_v53  ;;  %v1322_v60 = vpop.f32.mrb[15].mxu1 }
 0xad2   :  { %v1323_v61 = vadd.f32 %v3690_v53, %v1322_v60 }
 0xad4   :  { %v4394_v63 = vpack.c.bf16 %v1328_v56, %v1323_v61 }
 0xad6   :  { %4396 = vmatpush3.bf16.msk.msra.mxu0 %vm4848_vm7, %v4394_v63 }
 0xad8   :  { %v4089_v62 = vpop.f32.mrb[16].mxu1 }
 0xad9   :  { %v1413_v1 = vadd.f32 %v4089_v62, %v3693_v0  ;;  %v1407_v2 = vpop.f32.mrb[17].mxu1  ;;  %4095 = vmatmul.mubr.msk.f32.vlgmr.msra.gmra.mrb[24].mxu0 %vm250_vm9, %v4856_v31 }
 0xada   :  { %v1408_v3 = vadd.f32 %v3693_v0, %v1407_v2  ;;  %4097 = vmatprep.mubr.msk.f32.mxu0 %vm4698_vm1, %v4699_v13 }
 0xadc   :  { %v4398_v4 = vpack.c.bf16 %v1413_v1, %v1408_v3 }
 0xadd   :  { %4098 = vmatmul.mubr.msk.f32.gmra.mrb[26].mxu0 %vm250_vm9, %v4882_v36 }
 0xade   :  { %4400 = vmatpush3.bf16.msk.msra.mxu1 %vm4848_vm7, %v4398_v4  ;;  %4100 = vmatprep.mubr.msk.f32.mxu0 %vm4698_vm1, %v4699_v13 }
 0xae1   :  { %4108 = vmatmul.mubr.msk.f32.vlgmr.msra.gmra.mrb[18].mxu1 %vm250_vm9, %v4863_v32  ;;  %4101 = vmatmul.mubr.msk.f32.gmra.mrb[28].mxu0 %vm250_vm9, %v4893_v38 }
 0xae2   :  { %4110 = vmatprep.mubr.msk.f32.mxu1 %vm4698_vm1, %v4699_v13  ;;  %4122 = vmatprep.mubr.msk.f32.mxu0 %vm714_vm13, %v4978_v14 }
 0xae5   :  { %4111 = vmatmul.mubr.msk.f32.gmra.mrb[20].mxu1 %vm250_vm9, %v4885_v37 }
 0xae6   :  { %4113 = vmatprep.mubr.msk.f32.mxu1 %vm4698_vm1, %v4699_v13 }
 0xae9   :  { %4114 = vmatmul.mubr.msk.f32.gmra.mrb[22].mxu1 %vm250_vm9, %v4896_v39 }
 0xaea   :  { %4144 = vmatprep.mubr.msk.f32.mxu1 %vm714_vm13, %v4978_v14 }
 0xbac   :  { %v5097_v31 = vpop.f32.mrb[24].mxu0 }
 0xbad   :  { %v4096_v36 = vpop.f32.mrb[25].mxu0 }
 0xbb0   :  { %v5099_v38 = vpop.f32.mrb[26].mxu0 }
 0xbb1   :  { %v4099_v5 = vpop.f32.mrb[27].mxu0 }
 0xbb4   :  { %v1568_v6 = vpop.f32.mrb[18].mxu1  ;;  %v5101_v7 = vpop.f32.mrb[28].mxu0 }
 0xbb5   :  { %v1582_v8 = vadd.f32 %v1568_v6, %v5097_v31  ;;  %v4109_v9 = vpop.f32.mrb[19].mxu1  ;;  %v4102_v11 = vpop.f32.mrb[29].mxu0 }
 0xbb7   :  { %vm1585_vm4 = vcmp.gt.f32.partialorder %v1582_v8, 0.0  ;;  %v1588_v15 = vmul.f32 0.01, %v1582_v8 }
 0xbb8   :  { %v1573_v14 = vpop.f32.mrb[20].mxu1 }
 0xbb9   :  { %v1583_v28 = vadd.f32 %v1573_v14, %v5099_v38  ;;  %v4112_v17 = vpop.f32.mrb[21].mxu1  ;;  %v1591_v18 = vsel %vm1585_vm4, %v1582_v8, %v1588_v15 }
 0xbba   :  { %v1599_v27 = vmul.f32 %v3704_v16, %v1591_v18 }
 0xbbb   :  { %vm1586_vm5 = vcmp.gt.f32.partialorder %v1583_v28, 0.0  ;;  %v1589_v19 = vmul.f32 0.01, %v1583_v28 }
 0xbbc   :  { %v1578_v20 = vpop.f32.mrb[22].mxu1  ;;  %v1602_v21 = vsel %vm531_vm15, %v1599_v27, 0.0 }
 0xbbd   :  { %v1584_v23 = vadd.f32 %v1578_v20, %v5101_v7  ;;  %v4115_v24 = vpop.f32.mrb[23].mxu1  ;;  %1603 = vadd.xlane.f32.xlu0 %v1602_v21  ;;  %v1592_v25 = vsel %vm1586_vm5, %v1583_v28, %v1589_v19  ;;  %vm2428_vm5 = vcmask 257024  }
 0xbbe   :  { %v1600_v26 = vmul.f32 %v3704_v16, %v1592_v25 }
 0xbbf   :  { %vm1587_vm10 = vcmp.gt.f32.partialorder %v1584_v23, 0.0  ;;  %v1590_v30 = vmul.f32 0.01, %v1584_v23 }
 0xbc0   :  { %v1605_v33 = vsel %vm531_vm15, %v1600_v26, 0.0 }
 0xbc1   :  { %1606 = vadd.xlane.f32.xlu1 %v1605_v33  ;;  %v1593_v34 = vsel %vm1587_vm10, %v1584_v23, %v1590_v30  ;;  %vm2437_vm10 = vcmask 11264  }
 0xbc2   :  { %v1601_v40 = vmul.f32 %v3704_v16, %v1593_v34 }
 0xbc4   :  { %v1608_v41 = vsel %vm531_vm15, %v1601_v40, 0.0 }
 0xbc5   :  { %1609 = vadd.xlane.f32.xlu0 %v1608_v41 }
 0xc4a   :  { %v1604_v42 = vpop.xlane.xlu0 %1603 }
 0xc4b   :  { %v1611_v44 = vsel %vm676_vm6, %v1604_v42, -1e+30 }
 0xc4c   :  { %v1614_v47 = vsel %vm250_vm9, %v1611_v44, -inf }
 0xc4e   :  { %v1607_v43 = vpop.xlane.xlu1 %1606 }
 0xc4f   :  { %v1612_v45 = vsel %vm677_vm8, %v1607_v43, -1e+30 }
 0xc50   :  { %v1615_v46 = vsel %vm250_vm9, %v1612_v45, -inf }
 0xc51   :  { %v1617_v50 = vmax.f32 %v1614_v47, %v1615_v46 }
 0xc52   :  { %v1610_v48 = vpop.xlane.xlu0 %1609 }
 0xc53   :  { %v1613_v54 = vsel %vm678_vm11, %v1610_v48, -1e+30 }
 0xc54   :  { %v1616_v49 = vsel %vm250_vm9, %v1613_v54, -inf  ;;  %v1921_v54 = vld [vmem:[#allocation5 + $0x40] sm:$0xff] }
 0xc55   :  { %v1618_v55 = vmax.f32 %v1617_v50, %v1616_v49 }
 0xc57   :  { %v1619_v57 = vrot.slane %v1618_v55, 4 }
 0xc59   :  { %v1620_v58 = vmax.f32 %v1618_v55, %v1619_v57  ;;  %v1924_v55 = vld [vmem:[#allocation5 + $0x58] sm:$0xff]  ;;  %v1925_v57 = vld [vmem:[#allocation5 + $0x60] sm:$0xff] }
 0xc5b   :  { %v1621_v53 = vrot.slane %v1620_v58, 2 }
 0xc5d   :  { %v1622_v59 = vmax.f32 %v1620_v58, %v1621_v53  ;;  %v1926_v58 = vld [vmem:[#allocation5 + $0x68] sm:$0xff] }
 0xc5e   :  { %v4421_v53 = vpack.c.bf16 %v1926_v58, %v1925_v57 }
 0xc5f   :  { %v1623_v56 = vrot.slane %v1622_v59, 1 }
 0xc61   :  { %v1624_v60 = vmax.f32 %v1622_v59, %v1623_v56  ;;  %v1928_v59 = vld [vmem:[#allocation5 + $0x78] sm:$0xff] }
 0xc63   :  { %v1626_v61 = vmul.f32 %v4885_v37, %v1624_v60  ;;  %v1625_v63 = vmul.f32 %v4863_v32, %v1624_v60  ;;  %v1627_v1 = vmul.f32 %v4896_v39, %v1624_v60  ;;  %v3711_v60 = vld [vmem:[%s5443_s12 + $0x7] ss:$0 sm:$0xff] }
 0xc65   :  { %v1631_v0 = vsel %vm250_vm9, %v1626_v61, 0.0  ;;  %v1628_v62 = vsel %vm250_vm9, %v1625_v63, 0.0  ;;  %v1634_v2 = vsel %vm250_vm9, %v1627_v1, 0.0 }
 0xc66   :  { %1632 = vadd.xlane.f32.xlu1 %v1631_v0  ;;  %1629 = vadd.xlane.f32.xlu0 %v1628_v62 }
 0xc6a   :  { %1635 = vadd.xlane.f32.xlu0 %v1634_v2 }
 0xcf3   :  { %v1633_v3 = vpop.xlane.xlu1 %1632  ;;  %v1630_v4 = vpop.xlane.xlu0 %1629 }
 0xcf4   :  { %v1638_v36 = vsub.f32 %v1607_v43, %v1633_v3  ;;  %v1637_v5 = vsub.f32 %v1604_v42, %v1630_v4 }
 0xcf6   :  { %v1642_v6 = vmul.f32 1.442695, %v1638_v36  ;;  %v1640_v8 = vmul.f32 1.442695, %v1637_v5 }
 0xcf7   :  { %v1636_v9 = vpop.xlane.xlu0 %1635 }
 0xcf8   :  { %4560 = vpow2.f32 %v1642_v6  ;;  %v1639_v11 = vsub.f32 %v1610_v48, %v1636_v9 }
 0xcf9   :  { %4562 = vpow2.f32 %v1640_v8 }
 0xcfa   :  { %v1644_v15 = vmul.f32 1.442695, %v1639_v11 }
 0xcfc   :  { %4564 = vpow2.f32 %v1644_v15 }
 0xd02   :  { %v4561_v16 = vpop.eup %4560 }
 0xd03   :  { %v4563_v14 = vpop.eup %4562 }
 0xd04   :  { %v4401_v28 = vpack.c.bf16 %v4561_v16, %v4563_v14 }
 0xd06   :  { %v4565_v17 = vpop.eup %4564  ;;  %4402 = vmatprep.subr.bf16.mxu0 %v4401_v28 }
 0xd07   :  { %4404 = vmatpush3.bf16.msra.mxu0 %v4401_v28 }
 0xd08   :  { %4120 = vmatprep.subr.mxu0 %v4565_v17 }
 0xd0b   :  { %4121 = vmatpush3.msra.mxu0 %v4565_v17 }
 0xd0c   :  { %4123 = vmatmul.mubr.msk.f32.vlgmr.msra.gmra.mrb[30].mxu0 %vm714_vm13, %v4986_v35  ;;  %4405 = vmatprep.subr.bf16.mxu0 %v4697_v12 }
 0xd0d   :  { %4129 = vmatprep.mubr.msk.f32.mxu0 %vm4698_vm1, %v4699_v13 }
 0xddf   :  { %v4124_v18 = vpop.f32.mrb[30].mxu0 }
 0xde0   :  { %v1712_v27 = vpop.f32.mrb[31].mxu0 }
 0xde1   :  { %v4406_v19 = vpack.c.bf16 %v4124_v18, %v1712_v27 }
 0xde3   :  { %4408 = vmatpush3.bf16.msk.msra.mxu0 %vm4848_vm7, %v4406_v19 }
 0xde6   :  { %4130 = vmatmul.mubr.msk.f32.vlgmr.msra.gmra.mrb[32].mxu0 %vm250_vm9, %v4863_v32 }
 0xde7   :  { %4132 = vmatprep.mubr.msk.f32.mxu0 %vm4698_vm1, %v4699_v13 }
 0xdea   :  { %4133 = vmatmul.mubr.msk.f32.gmra.mrb[34].mxu0 %vm250_vm9, %v4885_v37 }
 0xdeb   :  { %4135 = vmatprep.mubr.msk.f32.mxu0 %vm4698_vm1, %v4699_v13 }
 0xdee   :  { %4136 = vmatmul.mubr.msk.f32.gmra.mrb[36].mxu0 %vm250_vm9, %v4896_v39 }
 0xeb9   :  { %v1790_v20 = vpop.f32.mrb[32].mxu0 }
 0xeba   :  { %v1791_v21 = vadd.f32 1e-16, %v1790_v20  ;;  %v4131_v23 = vpop.f32.mrb[33].mxu0 }
 0xebc   :  { %4566 = vrcp.f32 %v1791_v21 }
 0xebd   :  { %v1795_v24 = vpop.f32.mrb[34].mxu0 }
 0xebe   :  { %v1796_v25 = vadd.f32 1e-16, %v1795_v24  ;;  %v4134_v26 = vpop.f32.mrb[35].mxu0 }
 0xec0   :  { %4568 = vrcp.f32 %v1796_v25 }
 0xec1   :  { %v1800_v32 = vpop.f32.mrb[36].mxu0 }
 0xec2   :  { %v1801_v30 = vadd.f32 1e-16, %v1800_v32  ;;  %v4137_v33 = vpop.f32.mrb[37].mxu0 }
 0xec4   :  { %4570 = vrcp.f32 %v1801_v30 }
 0xec6   :  { %v4567_v34 = vpop.eup %4566 }
 0xec7   :  { %v1807_v37 = vmul.f32 %v4567_v34, %v4563_v14  ;;  %v3716_v14 = vld [vmem:[%s5442_s11 + $0x1] ss:$0 sm:$0xff] }
 0xec9   :  { %1812 = vperm.xlu1 %4531, %v1807_v37  }
 0xeca   :  { %v4569_v40 = vpop.eup %4568 }
 0xecb   :  { %v1808_v41 = vmul.f32 %v4569_v40, %v4561_v16 }
 0xecd   :  { %1817 = vperm.xlu0 %4530, %v1808_v41  }
 0xece   :  { %v4571_v42 = vpop.eup %4570 }
 0xecf   :  { %v1809_v39 = vmul.f32 %v4571_v42, %v4565_v17 }
 0xed1   :  { %1822 = vperm.xlu1 %4531, %v1809_v39  }
 0xf48   :  { %v1813_v43 = vpop.permute.xlu1 %1812 }
 0xf49   :  { %v1825_v45 = vmul.f32 %v1813_v43, %v5097_v31  ;;  %v1922_v31 = vld [vmem:[#allocation5 + $0x48] sm:$0xff] }
 0xf4a   :  { %v4413_v49 = vpack.c.bf16 %v1922_v31, %v1921_v54 }
 0xf4c   :  { %v1818_v44 = vpop.permute.xlu0 %1817  ;;  %4414 = vmatprep.subr.bf16.mxu0 %v4413_v49 }
 0xf4d   :  { %v1826_v46 = vmul.f32 %v1818_v44, %v5099_v38  ;;  %4416 = vmatpush3.bf16.msra.mxu0 %v4413_v49  ;;  %v1923_v38 = vld [vmem:[#allocation5 + $0x50] sm:$0xff] }
 0xf4f   :  { %v4409_v47 = vpack.c.bf16 %v1826_v46, %v1825_v45 }
 0xf50   :  { %v1823_v48 = vpop.permute.xlu1 %1822 }
 0xf51   :  { %v1827_v50 = vmul.f32 %v1823_v48, %v5101_v7  ;;  %4410 = vmatprep.subr.bf16.mxu1 %v4409_v47  ;;  %v4417_v7 = vpack.c.bf16 %v1924_v55, %v1923_v38 }
 0xf52   :  { %4412 = vmatpush3.bf16.msra.mxu1 %v4409_v47 }
 0xf53   :  { %4142 = vmatprep.subr.mxu1 %v1827_v50  ;;  %4418 = vmatprep.subr.bf16.mxu0 %v4417_v7 }
 0xf54   :  { %4420 = vmatpush3.bf16.msra.mxu0 %v4417_v7 }
 0xf55   :  { %4422 = vmatprep.subr.bf16.mxu0 %v4421_v53 }
 0xf56   :  { %4143 = vmatpush3.msra.mxu1 %v1827_v50 }
 0xf57   :  { %4145 = vmatmul.mubr.msk.f32.vlgmr.msra.gmra.mrb[24].mxu1 %vm714_vm13, %v4986_v35  ;;  %4429 = vmatprep.subr.bf16.mxu1 %v4697_v12  ;;  %v1927_v35 = vld [vmem:[#allocation5 + $0x70] sm:$0xff] }
 0xf58   :  { %4170 = vmatprep.mubr.msk.f32.mxu1 %vm4698_vm1, %v4699_v13  ;;  %4424 = vmatpush3.bf16.msra.mxu0 %v4421_v53  ;;  %v4425_v56 = vpack.c.bf16 %v1928_v59, %v1927_v35  ;;  %v132_v35 = vld [vmem:[%s5436_s5 + $0x8] sm:$0xf]  ;;  %v2153_v59 = vld [vmem:[#allocation2 + $0x80] sm:$0xff] }
 0xf5a   :  { %4426 = vmatprep.subr.bf16.mxu0 %v4425_v56 }
 0xf5c   :  { %4428 = vmatpush3.bf16.msra.mxu0 %v4425_v56  ;;  %v2154_v56 = vld [vmem:[#allocation2 + $0x88] sm:$0xff] }
0x102a   :  { %v4146_v61 = vpop.f32.mrb[24].mxu1 }
0x102b   :  { %v1905_v63 = vadd.f32 %v4146_v61, %v3711_v60  ;;  %v1899_v0 = vpop.f32.mrb[25].mxu1 }
0x102c   :  { %v1900_v62 = vadd.f32 %v3711_v60, %v1899_v0 }
0x102d   :  { %v1911_v1 = vmin.f32 %v1905_v63, 0.0  ;;  %vm1909_vm6 = vcmp.gt.f32.partialorder %v1905_v63, 0.0 }
0x102e   :  { %v1910_v2 = vmin.f32 %v1900_v62, 0.0  ;;  %vm1908_vm8 = vcmp.gt.f32.partialorder %v1900_v62, 0.0 }
0x102f   :  { %v1914_v3 = vmul.f32 1.442695, %v1911_v1  ;;  %v2156_v1 = vld [vmem:[#allocation2 + $0x98] sm:$0xff] }
0x1030   :  { %v1912_v4 = vmul.f32 1.442695, %v1910_v2 }
0x1031   :  { %4572 = vpow2.f32 %v1914_v3 }
0x1032   :  { %4574 = vpow2.f32 %v1912_v4  ;;  %v2243_v4 = vld [vmem:[#allocation2 + $0xa8] sm:$0xff] }
0x103b   :  { %v4573_v36 = vpop.eup %4572 }
0x103c   :  { %v4575_v5 = vpop.eup %4574  ;;  %v3715_v6 = vadd.f32 -1.0, %v4573_v36 }
0x103d   :  { %v3714_v8 = vadd.f32 -1.0, %v4575_v5 }
0x103e   :  { %v1919_v9 = vsel %vm1909_vm6, %v1905_v63, %v3715_v6  ;;  %v4433_v63 = vpack.c.bf16 %v2154_v56, %v2153_v59 }
0x103f   :  { %v1918_v11 = vsel %vm1908_vm8, %v1900_v62, %v3714_v8  ;;  %v1931_v16 = vsel %vm531_vm15, %v1919_v9, %v5048_v51  ;;  %v2155_v62 = vld [vmem:[#allocation2 + $0x90] sm:$0xff]  ;;  %v2245_v9 = vld [vmem:[#allocation2 + $0xb8] sm:$0xff] }
0x1040   :  { %v1930_v15 = vsel %vm531_vm15, %v1918_v11, %v5050_v52  ;;  %v4437_v3 = vpack.c.bf16 %v2156_v1, %v2155_v62  ;;  %v2244_v8 = vld [vmem:[#allocation2 + $0xb0] sm:$0xff] }
0x1041   :  { %4163 = vmatprep.mubr.msk.f32.mxu0 %vm1102_vm3, %v1930_v15  ;;  %v5206_v11 = vpack.c.bf16 %v2245_v9, %v2244_v8 }
0x1042   :  { %4164 = vmatmul.mubr.msk.f32.vlgmr.msra.gmra.mrb[38].mxu0 %vm1102_vm3, %v1931_v16 }
0x1115   :  { %v4165_v28 = vpop.f32.mrb[38].mxu0 }
0x1116   :  { %v2014_v17 = vadd.f32 %v4165_v28, %v3716_v14  ;;  %v2008_v18 = vpop.f32.mrb[39].mxu0 }
0x1117   :  { %v2009_v27 = vadd.f32 %v3716_v14, %v2008_v18 }
0x1118   :  { %2033 = vrot.lane.b32.xlu0 %v2014_v17, %s4701_s4  ;;  %v2018_v19 = vsub.f32 0.0, %v2014_v17 }
0x1119   :  { %2031 = vrot.lane.b32.xlu1 %v2009_v27, %s4701_s4  ;;  %v2017_v20 = vsub.f32 0.0, %v2009_v27 }
0x111a   :  { %v2021_v21 = vmul.f32 1.442695, %v2018_v19 }
0x111b   :  { %v2019_v23 = vmul.f32 1.442695, %v2017_v20 }
0x111c   :  { %4576 = vpow2.f32 %v2021_v21 }
0x111d   :  { %4578 = vpow2.f32 %v2019_v23 }
0x1126   :  { %v4577_v24 = vpop.eup %4576 }
0x1127   :  { %v4579_v25 = vpop.eup %4578  ;;  %v2024_v26 = vadd.f32 1.0, %v4577_v24 }
0x1128   :  { %v2023_v32 = vadd.f32 1.0, %v4579_v25 }
0x1129   :  { %4580 = vrcp.f32 %v2024_v26 }
0x112a   :  { %4582 = vrcp.f32 %v2023_v32 }
0x1133   :  { %v4581_v30 = vpop.eup %4580 }
0x1134   :  { %v4583_v34 = vpop.eup %4582  ;;  %v2052_v47 = vsub.f32 1.0, %v4581_v30  ;;  %v2064_v54 = vmul.f32 %v4581_v30, %v5048_v51  ;;  %v131_v51 = vld [vmem:[%s5436_s5] sm:$0xff] }
0x1135   :  { %v2051_v50 = vsub.f32 1.0, %v4583_v34  ;;  %v2063_v38 = vmul.f32 %v4583_v34, %v5050_v52  ;;  %v3652_v52 = vld [vmem:[%s5437_s6] ss:$0 sm:$0xff] }
0x1136   :  { %vm150_vm11 = vcmp.eq.s32.totalorder %v4971_v10, %v3652_v52  ;;  %v2242_v10 = vld [vmem:[#allocation2 + $0xa0] sm:$0xff] }
0x1137   :  { %v5187_v2 = vsel %vm150_vm11, 1.0, %v4699_v13  ;;  %v5192_v36 = vpack.c.bf16 %v2243_v4, %v2242_v10 }
0x118a   :  { %v2034_v33 = vpop.permute.xlu0 %2033 }
0x118b   :  { %v2038_v37 = vmul.f32 %v4581_v30, %v2034_v33  ;;  %v2032_v40 = vpop.permute.xlu1 %2031 }
0x118c   :  { %v2037_v41 = vmul.f32 %v4583_v34, %v2032_v40 }
0x118d   :  { %2043 = vrot.lane.b32.xlu0 %v2038_v37, %s4702_s30  ;;  %v5246_v37 = vld [vmem:[%s5443_s12 + $0xa] ss:$0 sm:$0xff] }
0x118e   :  { %2041 = vrot.lane.b32.xlu1 %v2037_v41, %s4702_s30 }
0x11ff   :  { %v2044_v42 = vpop.permute.xlu0 %2043 }
0x1200   :  { %v2048_v39 = vadd.f32 %v2044_v42, %v2014_v17  ;;  %v2042_v43 = vpop.permute.xlu1 %2041 }
0x1201   :  { %v2047_v44 = vadd.f32 %v2042_v43, %v2009_v27  ;;  %v5220_v27 = vld [vmem:[%s5443_s12 + $0x9] ss:$0 sm:$0xff] }
0x1202   :  { %4584 = vtanh.f32 %v2048_v39 }
0x1203   :  { %4586 = vtanh.f32 %v2047_v44 }
0x120c   :  { %v4585_v45 = vpop.eup %4584 }
0x120d   :  { %v4587_v46 = vpop.eup %4586  ;;  %2057 = vrot.lane.b32.xlu0 %v4585_v45, %s4703_s14 }
0x120e   :  { %2055 = vrot.lane.b32.xlu1 %v4587_v46, %s4703_s14 }
0x127f   :  { %v2058_v48 = vpop.permute.xlu0 %2057 }
0x1280   :  { %v2062_v31 = vmul.f32 %v2058_v48, %v2052_v47  ;;  %v2056_v49 = vpop.permute.xlu1 %2055 }
0x1281   :  { %v2061_v55 = vmul.f32 %v2056_v49, %v2051_v50 }
0x1282   :  { %v2066_v7 = vadd.f32 %v2064_v54, %v2062_v31 }
0x1283   :  { %v2065_v57 = vadd.f32 %v2063_v38, %v2061_v55 }
0x1284   :  { %v2068_v58 = vmax.f32 %v2066_v7, 0.0 }
0x1285   :  { %v2067_v53 = vmax.f32 %v2065_v57, 0.0 }
0x1286   :  { %2073 = vrot.lane.b32.xlu0 %v2068_v58, %s4703_s14 }
0x1287   :  { %2071 = vrot.lane.b32.xlu1 %v2067_v53, %s4703_s14 }
0x128a   :  { %137 = vperm.xlu0 %4530, %v132_v35  }
0x128b   :  { %134 = vperm.xlu1 %4531, %v131_v51  }
0x12f8   :  { %v2074_v60 = vpop.permute.xlu0 %2073 }
0x12f9   :  { %v2072_v61 = vpop.permute.xlu1 %2071 }
0x12fa   :  { %v4430_v0 = vpack.c.bf16 %v2074_v60, %v2072_v61 }
0x12fc   :  { %4432 = vmatpush3.bf16.msk.msra.mxu1 %vm4848_vm7, %v4430_v0 }
0x12fd   :  { %4434 = vmatprep.subr.bf16.mxu1 %v4433_v63 }
0x12ff   :  { %4171 = vmatmul.mubr.msk.f32.vlgmr.msra.gmra.mrb[26].mxu1 %vm250_vm9, %v5187_v2 }
0x1300   :  { %4436 = vmatpush3.bf16.msra.mxu1 %v4433_v63  ;;  %4181 = vmatprep.mubr.msk.f32.mxu1 %vm531_vm15, %v2072_v61 }
0x1301   :  { %4438 = vmatprep.subr.bf16.mxu1 %v4437_v3 }
0x1304   :  { %4440 = vmatpush3.bf16.msra.mxu1 %v4437_v3 }
0x1305   :  { %4441 = vmatprep.subr.bf16.mxu1 %v4697_v12 }
0x1307   :  { %4182 = vmatmul.mubr.msk.f32.vlgmr.msra.gmra.mrb[28].mxu1 %vm531_vm15, %v2074_v60 }
0x1308   :  { %4443 = vmatpush3.bf16.msra.mxu1 %v5192_v36  ;;  %4192 = vmatprep.mubr.msk.f32.mxu1 %vm4698_vm1, %v4699_v13 }
0x1309   :  { %4444 = vmatprep.subr.bf16.mxu1 %v4697_v12  ;;  %v138_v18 = vpop.permute.xlu0 %137 }
0x130a   :  { %v135_v5 = vpop.permute.xlu1 %134  ;;  %vm140_vm0 = vcmp.eq.s32.totalorder %v4841_v22, %v138_v18 }
0x130b   :  { %vm139_vm13 = vcmp.eq.s32.totalorder %v4841_v22, %v135_v5  ;;  %v5226_v23 = vsel %vm140_vm0, 1.0, %v4699_v13  ;;  %v3721_v22 = vld [vmem:[%s5443_s12 + $0x8] ss:$0 sm:$0xff] }
0x130c   :  { %v5202_v6 = vsel %vm139_vm13, 1.0, %v4699_v13  ;;  %4446 = vmatpush3.bf16.msra.mxu1 %v5206_v11  ;;  %vm2433_vm6 = vcmp.gt.f32.partialorder %v5226_v23, 0.5 }
0x130d   :  { %4197 = vmatprep.mubr.msk.f32.mxu0 %vm2324_vm12, %v5202_v6  ;;  %vm2432_vm8 = vcmp.gt.f32.partialorder %v5202_v6, 0.5 }
0x13d2   :  { %v5209_v15 = vpop.f32.mrb[26].mxu1 }
0x13d3   :  { %v2151_v16 = vmax.f32 %v5209_v15, 0.0  ;;  %v4172_v14 = vpop.f32.mrb[27].mxu1  ;;  %v2712_v15 = vld [vmem:[#allocation5 + $0x80] sm:$0xff] }
0x13d5   :  { %4193 = vmatmul.mubr.msk.f32.vlgmr.msra.gmra.mrb[30].mxu1 %vm531_vm15, %v2151_v16 }
0x13d6   :  { %4209 = vmatprep.mubr.msk.f32.mxu1 %vm2324_vm12, %v5202_v6 }
0x13da   :  { %v4183_v28 = vpop.f32.mrb[28].mxu1 }
0x13db   :  { %v2232_v17 = vpop.f32.mrb[29].mxu1  ;;  %v5237_v24 = vadd.f32 %v4183_v28, %v3721_v22 }
0x13dc   :  { %v5239_v25 = vadd.f32 %v3721_v22, %v2232_v17 }
0x14a8   :  { %v2320_v19 = vpop.f32.mrb[30].mxu1 }
0x14a9   :  { %v2321_v20 = vadd.f32 %v5220_v27, %v2320_v19  ;;  %v4194_v21 = vpop.f32.mrb[31].mxu1 }
0x14ab   :  { %4195 = vmatprep.subr.msk.mxu0 %vm2331_vm14, %v2321_v20 }
0x14ac   :  { %4196 = vmatpush3.msk.msra.mxu0 %vm2331_vm14, %v2321_v20 }
0x14ad   :  { %4198 = vmatmul.mubr.msk.f32.vlgmr.msra.gmra.mrb[40].mxu0 %vm2324_vm12, %v5226_v23  ;;  %4447 = vmatprep.subr.bf16.mxu0 %v4697_v12 }
0x14ae   :  { %4204 = vmatprep.mubr.msk.f32.mxu0 %vm4698_vm1, %v4699_v13 }
0x1580   :  { %v4199_v26 = vpop.f32.mrb[40].mxu0 }
0x1581   :  { %v2411_v32 = vadd.f32 %v4199_v26, %v5237_v24  ;;  %v2401_v30 = vpop.f32.mrb[41].mxu0 }
0x1582   :  { %v2410_v33 = vadd.f32 %v2401_v30, %v5239_v25 }
0x1583   :  { %vm2413_vm2 = vcmp.gt.f32.partialorder %v2411_v32, 0.0  ;;  %v2415_v34 = vmul.f32 0.01, %v2411_v32 }
0x1584   :  { %vm2412_vm4 = vcmp.gt.f32.partialorder %v2410_v33, 0.0  ;;  %v2414_v40 = vmul.f32 0.01, %v2410_v33 }
0x1585   :  { %v2417_v41 = vsel %vm2413_vm2, %v2411_v32, %v2415_v34  ;;  %v2714_v34 = vld [vmem:[#allocation5 + $0x90] sm:$0xff] }
0x1586   :  { %v2424_v42 = vmul.f32 %v5246_v37, %v2417_v41  ;;  %v2416_v39 = vsel %vm2412_vm4, %v2410_v33, %v2414_v40  ;;  %v2715_v40 = vld [vmem:[#allocation5 + $0x98] sm:$0xff] }
0x1587   :  { %v2423_v43 = vmul.f32 %v5246_v37, %v2416_v39  ;;  %v5297_v41 = vpack.c.bf16 %v2715_v40, %v2714_v34 }
0x1588   :  { %v2429_v44 = vsel %vm2428_vm5, %v2424_v42, 0.0  ;;  %v2717_v42 = vld [vmem:[#allocation5 + $0xa8] sm:$0xff] }
0x1589   :  { %2430 = vadd.xlane.f32.xlu0 %v2429_v44  ;;  %v2425_v45 = vsel %vm531_vm15, %v2423_v43, 0.0  ;;  %v2719_v43 = vld [vmem:[#allocation5 + $0xb8] sm:$0xff] }
0x158a   :  { %2426 = vadd.xlane.f32.xlu1 %v2425_v45  ;;  %v5311_v45 = vld [vmem:[%s5443_s12 + $0xb] ss:$0 sm:$0xff] }
0x1616   :  { %v2431_v46 = vpop.xlane.xlu0 %2430 }
0x1617   :  { %v2435_v47 = vsel %vm2433_vm6, %v2431_v46, -1e+30  ;;  %v2427_v48 = vpop.xlane.xlu1 %2426 }
0x1618   :  { %v2438_v50 = vsel %vm2437_vm10, %v2435_v47, -inf  ;;  %v2434_v54 = vsel %vm2432_vm8, %v2427_v48, -1e+30 }
0x1619   :  { %v2436_v31 = vsel %vm2324_vm12, %v2434_v54, -inf }
0x161a   :  { %v2439_v49 = vmax.f32 %v2436_v31, %v2438_v50 }
0x161c   :  { %v2440_v38 = vrot.slane %v2439_v49, 4 }
0x161e   :  { %v2441_v55 = vmax.f32 %v2439_v49, %v2440_v38 }
0x1620   :  { %v2442_v7 = vrot.slane %v2441_v55, 2 }
0x1622   :  { %v2443_v57 = vmax.f32 %v2441_v55, %v2442_v7 }
0x1624   :  { %v2444_v58 = vrot.slane %v2443_v57, 1 }
0x1626   :  { %v2445_v53 = vmax.f32 %v2443_v57, %v2444_v58  ;;  %v5321_v57 = vld [vmem:[%s5442_s11 + $0x2] ss:$0 sm:$0xff] }
0x1628   :  { %v2447_v35 = vmul.f32 %v5226_v23, %v2445_v53  ;;  %v2446_v51 = vmul.f32 %v5202_v6, %v2445_v53 }
0x162a   :  { %v2451_v52 = vsel %vm2437_vm10, %v2447_v35, 0.0  ;;  %v2448_v59 = vsel %vm2324_vm12, %v2446_v51, 0.0 }
0x162b   :  { %2452 = vadd.xlane.f32.xlu1 %v2451_v52  ;;  %2449 = vadd.xlane.f32.xlu0 %v2448_v59 }
0x16b8   :  { %v2453_v56 = vpop.xlane.xlu1 %2452  ;;  %v2450_v60 = vpop.xlane.xlu0 %2449 }
0x16b9   :  { %v2455_v61 = vsub.f32 %v2431_v46, %v2453_v56  ;;  %v2454_v63 = vsub.f32 %v2427_v48, %v2450_v60 }
0x16bb   :  { %v2458_v0 = vmul.f32 1.442695, %v2455_v61  ;;  %v2456_v62 = vmul.f32 1.442695, %v2454_v63 }
0x16bd   :  { %4588 = vpow2.f32 %v2458_v0 }
0x16be   :  { %4590 = vpow2.f32 %v2456_v62 }
0x16c7   :  { %v4589_v1 = vpop.eup %4588 }
0x16c8   :  { %v4591_v3 = vpop.eup %4590 }
0x16c9   :  { %v4448_v10 = vpack.c.bf16 %v4589_v1, %v4591_v3 }
0x16cb   :  { %4450 = vmatpush3.bf16.msk.msra.mxu0 %vm4848_vm7, %v4448_v10 }
0x16cc   :  { %4451 = vmatprep.subr.bf16.mxu0 %v4697_v12 }
0x16ce   :  { %4205 = vmatmul.mubr.msk.f32.vlgmr.msra.gmra.mrb[42].mxu0 %vm250_vm9, %v5187_v2 }
0x16cf   :  { %4216 = vmatprep.mubr.msk.f32.mxu0 %vm4698_vm1, %v4699_v13 }
0x17a1   :  { %v2529_v4 = vpop.f32.mrb[42].mxu0 }
0x17a2   :  { %4207 = vmatprep.subr.msk.mxu1 %vm2331_vm14, %v2529_v4  ;;  %v4206_v5 = vpop.f32.mrb[43].mxu0 }
0x17a3   :  { %4208 = vmatpush3.msk.msra.mxu1 %vm2331_vm14, %v2529_v4 }
0x17a4   :  { %4210 = vmatmul.mubr.msk.f32.vlgmr.msra.gmra.mrb[32].mxu1 %vm2324_vm12, %v5226_v23  ;;  %4455 = vmatprep.subr.bf16.mxu1 %v4697_v12 }
0x17a5   :  { %4235 = vmatprep.mubr.msk.f32.mxu1 %vm4698_vm1, %v4699_v13 }
0x1877   :  { %v4211_v8 = vpop.f32.mrb[32].mxu1 }
0x1878   :  { %v2608_v9 = vadd.f32 1e-16, %v4211_v8  ;;  %v2602_v14 = vpop.f32.mrb[33].mxu1 }
0x1879   :  { %v2603_v28 = vadd.f32 1e-16, %v2602_v14 }
0x187a   :  { %4592 = vrcp.f32 %v2608_v9 }
0x187b   :  { %4594 = vrcp.f32 %v2603_v28 }
0x1884   :  { %v4593_v17 = vpop.eup %4592 }
0x1885   :  { %v4595_v18 = vpop.eup %4594  ;;  %v2614_v19 = vmul.f32 %v4593_v17, %v4589_v1 }
0x1886   :  { %v2613_v20 = vmul.f32 %v4595_v18, %v4591_v3 }
0x1887   :  { %2622 = vperm.xlu1 %4531, %v2614_v19  }
0x1888   :  { %2617 = vperm.xlu0 %4530, %v2613_v20  }
0x188b   :  { %2721 = vrot.lane.b32.xlu1 %v2151_v16, %s4701_s4  ;;  %v2713_v16 = vld [vmem:[#allocation5 + $0x88] sm:$0xff] }
0x188c   :  { %v5293_v33 = vpack.c.bf16 %v2713_v16, %v2712_v15 }
0x188e   :  { %4457 = vmatpush3.bf16.msra.mxu1 %v5293_v33 }
0x188f   :  { %4458 = vmatprep.subr.bf16.mxu1 %v4697_v12 }
0x1892   :  { %4460 = vmatpush3.bf16.msra.mxu1 %v5297_v41 }
0x1893   :  { %4461 = vmatprep.subr.bf16.mxu1 %v4697_v12 }
0x1906   :  { %v2623_v21 = vpop.permute.xlu1 %2622 }
0x1907   :  { %v2626_v22 = vmul.f32 %v2623_v21, %v5237_v24  ;;  %v2618_v26 = vpop.permute.xlu0 %2617 }
0x1908   :  { %v2625_v32 = vmul.f32 %v2618_v26, %v5239_v25 }
0x190a   :  { %v4452_v30 = vpack.c.bf16 %v2626_v22, %v2625_v32  ;;  %v2722_v38 = vpop.permute.xlu1 %2721 }
0x190c   :  { %4454 = vmatpush3.bf16.msk.msra.mxu0 %vm4848_vm7, %v4452_v30 }
0x190d   :  { %4467 = vmatprep.subr.bf16.mxu0 %v4697_v12 }
0x190f   :  { %4217 = vmatmul.mubr.msk.f32.vlgmr.msra.gmra.mrb[44].mxu0 %vm250_vm9, %v5187_v2 }
0x1910   :  { %4469 = vmatpush3.bf16.msra.mxu0 %v5192_v36  ;;  %4246 = vmatprep.mubr.msk.f32.mxu0 %vm4698_vm1, %v4699_v13  ;;  %v2716_v36 = vld [vmem:[#allocation5 + $0xa0] sm:$0xff] }
0x1911   :  { %4470 = vmatprep.subr.bf16.mxu0 %v4697_v12  ;;  %v5301_v39 = vpack.c.bf16 %v2717_v42, %v2716_v36 }
0x1913   :  { %4463 = vmatpush3.bf16.msra.mxu1 %v5301_v39 }
0x1914   :  { %4472 = vmatpush3.bf16.msra.mxu0 %v5206_v11  ;;  %4464 = vmatprep.subr.bf16.mxu1 %v4697_v12  ;;  %v2718_v11 = vld [vmem:[#allocation5 + $0xb0] sm:$0xff] }
0x1915   :  { %v5305_v44 = vpack.c.bf16 %v2719_v43, %v2718_v11 }
0x1917   :  { %4466 = vmatpush3.bf16.msra.mxu1 %v5305_v44 }
0x19e2   :  { %v2701_v46 = vpop.f32.mrb[44].mxu0 }
0x19e3   :  { %v2702_v47 = vadd.f32 %v5311_v45, %v2701_v46  ;;  %v4218_v48 = vpop.f32.mrb[45].mxu0 }
0x19e5   :  { %v2706_v50 = vmin.f32 %v2702_v47, 0.0  ;;  %vm2705_vm11 = vcmp.gt.f32.partialorder %v2702_v47, 0.0 }
0x19e7   :  { %v2707_v54 = vmul.f32 1.442695, %v2706_v50 }
0x19e9   :  { %4596 = vpow2.f32 %v2707_v54 }
0x19f3   :  { %v4597_v31 = vpop.eup %4596 }
0x19f4   :  { %v3738_v49 = vadd.f32 -1.0, %v4597_v31 }
0x19f6   :  { %v2710_v55 = vsel %vm2705_vm11, %v2702_v47, %v3738_v49 }
0x19f7   :  { %v2724_v7 = vsel %vm531_vm15, %v2710_v55, %v2722_v38 }
0x19f8   :  { %4236 = vmatmul.mubr.msk.f32.vlgmr.msra.gmra.mrb[34].mxu1 %vm1102_vm3, %v2724_v7 }
0x19f9   :  { %4263 = vmatprep.mubr.msk.f32.mxu1 %vm2324_vm12, %v5202_v6 }
0x1acb   :  { %v2798_v58 = vpop.f32.mrb[34].mxu1 }
0x1acc   :  { %v2799_v53 = vadd.f32 %v5321_v57, %v2798_v58  ;;  %v4237_v35 = vpop.f32.mrb[35].mxu1 }
0x1ace   :  { %2809 = vrot.lane.b32.xlu0 %v2799_v53, %s4701_s4  ;;  %v2802_v51 = vsub.f32 0.0, %v2799_v53 }
0x1ad0   :  { %v2803_v52 = vmul.f32 1.442695, %v2802_v51 }
0x1ad2   :  { %4598 = vpow2.f32 %v2803_v52 }
0x1adc   :  { %v4599_v59 = vpop.eup %4598 }
0x1add   :  { %v2805_v56 = vadd.f32 1.0, %v4599_v59 }
0x1adf   :  { %4600 = vrcp.f32 %v2805_v56 }
0x1ae9   :  { %v4601_v60 = vpop.eup %4600 }
0x1aea   :  { %v2819_v3 = vsub.f32 1.0, %v4601_v60  ;;  %v2825_v4 = vmul.f32 %v4601_v60, %v2722_v38 }
0x1b40   :  { %v2810_v61 = vpop.permute.xlu0 %2809 }
0x1b41   :  { %v2812_v63 = vmul.f32 %v4601_v60, %v2810_v61 }
0x1b43   :  { %2814 = vrot.lane.b32.xlu1 %v2812_v63, %s4702_s30 }
0x1bb5   :  { %v2815_v0 = vpop.permute.xlu1 %2814 }
0x1bb6   :  { %v2817_v62 = vadd.f32 %v2815_v0, %v2799_v53 }
0x1bb8   :  { %4602 = vtanh.f32 %v2817_v62 }
0x1bc2   :  { %v4603_v1 = vpop.eup %4602 }
0x1bc3   :  { %2821 = vrot.lane.b32.xlu0 %v4603_v1, %s4703_s14 }
0x1c35   :  { %v2822_v10 = vpop.permute.xlu0 %2821 }
0x1c36   :  { %v2824_v5 = vmul.f32 %v2822_v10, %v2819_v3 }
0x1c38   :  { %v2826_v8 = vadd.f32 %v2825_v4, %v2824_v5 }
0x1c3a   :  { %v5327_v9 = vmax.f32 %v2826_v8, 0.0 }
0x1c3c   :  { %2829 = vrot.lane.b32.xlu1 %v5327_v9, %s4703_s14 }
0x1cae   :  { %v2830_v14 = vpop.permute.xlu1 %2829 }
0x1caf   :  { %4247 = vmatmul.mubr.msk.f32.vlgmr.msra.gmra.mrb[46].mxu0 %vm531_vm15, %v2830_v14 }
0x1cb0   :  { %4251 = vmatprep.mubr.msk.f32.mxu0 %vm2324_vm12, %v5202_v6 }
0x1d82   :  { %v2899_v28 = vpop.f32.mrb[46].mxu0 }
0x1d83   :  { %v2900_v17 = vadd.f32 %v5220_v27, %v2899_v28  ;;  %v4248_v18 = vpop.f32.mrb[47].mxu0 }
0x1d85   :  { %4249 = vmatprep.subr.msk.mxu0 %vm2331_vm14, %v2900_v17 }
0x1d86   :  { %4250 = vmatpush3.msk.msra.mxu0 %vm2331_vm14, %v2900_v17 }
0x1d87   :  { %4252 = vmatmul.mubr.msk.f32.vlgmr.msra.gmra.mrb[48].mxu0 %vm2324_vm12, %v5226_v23  ;;  %4473 = vmatprep.subr.bf16.mxu0 %v4697_v12 }
0x1d88   :  { %4258 = vmatprep.mubr.msk.f32.mxu0 %vm4698_vm1, %v4699_v13 }
0x1e5a   :  { %v4253_v19 = vpop.f32.mrb[48].mxu0 }
0x1e5b   :  { %v2982_v20 = vadd.f32 %v4253_v19, %v5237_v24  ;;  %v2972_v21 = vpop.f32.mrb[49].mxu0 }
0x1e5c   :  { %v2981_v22 = vadd.f32 %v2972_v21, %v5239_v25 }
0x1e5d   :  { %vm2984_vm13 = vcmp.gt.f32.partialorder %v2982_v20, 0.0  ;;  %v2986_v27 = vmul.f32 0.01, %v2982_v20 }
0x1e5e   :  { %vm2983_vm0 = vcmp.gt.f32.partialorder %v2981_v22, 0.0  ;;  %v2985_v26 = vmul.f32 0.01, %v2981_v22 }
0x1e5f   :  { %v2988_v32 = vsel %vm2984_vm13, %v2982_v20, %v2986_v27 }
0x1e60   :  { %v2990_v30 = vmul.f32 %v5246_v37, %v2988_v32  ;;  %v2987_v15 = vsel %vm2983_vm0, %v2981_v22, %v2985_v26 }
0x1e61   :  { %v2989_v16 = vmul.f32 %v5246_v37, %v2987_v15 }
0x1e62   :  { %v2994_v34 = vsel %vm2428_vm5, %v2990_v30, 0.0 }
0x1e63   :  { %2995 = vadd.xlane.f32.xlu1 %v2994_v34  ;;  %v2991_v40 = vsel %vm531_vm15, %v2989_v16, 0.0 }
0x1e64   :  { %2992 = vadd.xlane.f32.xlu0 %v2991_v40 }
0x1ef0   :  { %v2996_v36 = vpop.xlane.xlu1 %2995 }
0x1ef1   :  { %v2998_v42 = vsel %vm2433_vm6, %v2996_v36, -1e+30  ;;  %v2993_v11 = vpop.xlane.xlu0 %2992 }
0x1ef2   :  { %v3000_v43 = vsel %vm2437_vm10, %v2998_v42, -inf  ;;  %v2997_v46 = vsel %vm2432_vm8, %v2993_v11, -1e+30 }
0x1ef3   :  { %v2999_v47 = vsel %vm2324_vm12, %v2997_v46, -inf }
0x1ef4   :  { %v3001_v48 = vmax.f32 %v2999_v47, %v3000_v43  ;;  %v3370_v43 = vld [vmem:[#allocation2 + $0xc8] sm:$0xff]  ;;  %v3372_v47 = vld [vmem:[#allocation2 + $0xd8] sm:$0xff] }
0x1ef6   :  { %v3002_v37 = vrot.slane %v3001_v48, 4 }
0x1ef8   :  { %v3003_v50 = vmax.f32 %v3001_v48, %v3002_v37 }
0x1efa   :  { %v3004_v54 = vrot.slane %v3003_v50, 2 }
0x1efc   :  { %v3005_v31 = vmax.f32 %v3003_v50, %v3004_v54 }
0x1efe   :  { %v3006_v49 = vrot.slane %v3005_v31, 1 }
0x1f00   :  { %v3007_v38 = vmax.f32 %v3005_v31, %v3006_v49 }
0x1f02   :  { %v3008_v55 = vmul.f32 %v5202_v6, %v3007_v38  ;;  %v3009_v58 = vmul.f32 %v5226_v23, %v3007_v38 }
0x1f04   :  { %v3010_v7 = vsel %vm2324_vm12, %v3008_v55, 0.0  ;;  %v3013_v53 = vsel %vm2437_vm10, %v3009_v58, 0.0  ;;  %v3456_v58 = vld [vmem:[#allocation2 + $0xe0] sm:$0xff] }
0x1f05   :  { %3011 = vadd.xlane.f32.xlu0 %v3010_v7 }
0x1f09   :  { %3014 = vadd.xlane.f32.xlu0 %v3013_v53  ;;  %v3457_v53 = vld [vmem:[#allocation2 + $0xe8] sm:$0xff] }
0x1f92   :  { %v3012_v35 = vpop.xlane.xlu0 %3011 }
0x1f93   :  { %v3016_v51 = vsub.f32 %v2993_v11, %v3012_v35  ;;  %v3369_v11 = vld [vmem:[#allocation2 + $0xc0] sm:$0xff]  ;;  %v4500_v35 = vpack.c.bf16 %v3457_v53, %v3456_v58 }
0x1f94   :  { %v4494_v46 = vpack.c.bf16 %v3370_v43, %v3369_v11 }
0x1f95   :  { %v3018_v52 = vmul.f32 1.442695, %v3016_v51  ;;  %v3458_v51 = vld [vmem:[#allocation2 + $0xf0] sm:$0xff] }
0x1f96   :  { %v3015_v59 = vpop.xlane.xlu0 %3014 }
0x1f97   :  { %v3017_v56 = vsub.f32 %v2996_v36, %v3015_v59  ;;  %4604 = vpow2.f32 %v3018_v52  ;;  %v3459_v52 = vld [vmem:[#allocation2 + $0xf8] sm:$0xff]  ;;  %v3754_v59 = vld [vmem:[%s5443_s12 + $0xc] ss:$0 sm:$0xff] }
0x1f99   :  { %v3020_v60 = vmul.f32 1.442695, %v3017_v56 }
0x1f9b   :  { %4606 = vpow2.f32 %v3020_v60 }
0x1fa1   :  { %v4605_v61 = vpop.eup %4604 }
0x1fa5   :  { %v4607_v63 = vpop.eup %4606 }
0x1fa6   :  { %v4474_v0 = vpack.c.bf16 %v4607_v63, %v4605_v61 }
0x1fa8   :  { %4476 = vmatpush3.bf16.msk.msra.mxu0 %vm4848_vm7, %v4474_v0 }
0x1fa9   :  { %4477 = vmatprep.subr.bf16.mxu0 %v4697_v12 }
0x1fab   :  { %4259 = vmatmul.mubr.msk.f32.vlgmr.msra.gmra.mrb[50].mxu0 %vm250_vm9, %v5187_v2 }
0x1fac   :  { %4270 = vmatprep.mubr.msk.f32.mxu0 %vm4698_vm1, %v4699_v13 }
0x207e   :  { %v3091_v6 = vpop.f32.mrb[50].mxu0 }
0x207f   :  { %4261 = vmatprep.subr.msk.mxu1 %vm2331_vm14, %v3091_v6  ;;  %v4260_v62 = vpop.f32.mrb[51].mxu0 }
0x2080   :  { %4262 = vmatpush3.msk.msra.mxu1 %vm2331_vm14, %v3091_v6  ;;  %v3542_v6 = vld [vmem:[#allocation2 + $0x108] sm:$0xff] }
0x2081   :  { %4264 = vmatmul.mubr.msk.f32.vlgmr.msra.gmra.mrb[36].mxu1 %vm2324_vm12, %v5226_v23  ;;  %4481 = vmatprep.subr.bf16.mxu1 %v4697_v12 }
0x2082   :  { %4483 = vmatpush3.bf16.msra.mxu1 %v5293_v33  ;;  %4289 = vmatprep.mubr.msk.f32.mxu1 %vm4698_vm1, %v4699_v13 }
0x2083   :  { %4484 = vmatprep.subr.bf16.mxu1 %v4697_v12 }
0x2086   :  { %4486 = vmatpush3.bf16.msra.mxu1 %v5297_v41 }
0x2087   :  { %4487 = vmatprep.subr.bf16.mxu1 %v4697_v12 }
0x208a   :  { %4489 = vmatpush3.bf16.msra.mxu1 %v5301_v39 }
0x208b   :  { %4490 = vmatprep.subr.bf16.mxu1 %v4697_v12 }
0x208e   :  { %4492 = vmatpush3.bf16.msra.mxu1 %v5305_v44 }
0x208f   :  { %4505 = vmatprep.subr.bf16.mxu1 %v4697_v12 }
0x2154   :  { %v4265_v23 = vpop.f32.mrb[36].mxu1 }
0x2155   :  { %v3170_v1 = vadd.f32 1e-16, %v4265_v23  ;;  %v3164_v33 = vpop.f32.mrb[37].mxu1  ;;  %v3543_v23 = vld [vmem:[#allocation2 + $0x110] sm:$0xff] }
0x2156   :  { %v3165_v3 = vadd.f32 1e-16, %v3164_v33 }
0x2157   :  { %4608 = vrcp.f32 %v3170_v1  ;;  %v3544_v1 = vld [vmem:[#allocation2 + $0x118] sm:$0xff] }
0x2158   :  { %4610 = vrcp.f32 %v3165_v3  ;;  %v4509_v33 = vpack.c.bf16 %v3544_v1, %v3543_v23  ;;  %v3756_v3 = vld [vmem:[%s5443_s12 + $0xd] ss:$0 sm:$0xff] }
0x2161   :  { %v4609_v10 = vpop.eup %4608 }
0x2162   :  { %v4611_v4 = vpop.eup %4610  ;;  %v3176_v5 = vmul.f32 %v4609_v10, %v4607_v63 }
0x2163   :  { %v3175_v41 = vmul.f32 %v4611_v4, %v4605_v61 }
0x2164   :  { %3184 = vperm.xlu0 %4530, %v3176_v5  }
0x2165   :  { %3179 = vperm.xlu1 %4531, %v3175_v41  }
0x21e3   :  { %v3185_v8 = vpop.permute.xlu0 %3184 }
0x21e4   :  { %v3188_v39 = vmul.f32 %v3185_v8, %v5237_v24  ;;  %v3180_v14 = vpop.permute.xlu1 %3179 }
0x21e5   :  { %v3187_v44 = vmul.f32 %v3180_v14, %v5239_v25 }
0x21e7   :  { %v4478_v28 = vpack.c.bf16 %v3188_v39, %v3187_v44  ;;  %v3758_v39 = vld [vmem:[%s5443_s12 + $0xe] ss:$0 sm:$0xff] }
0x21e9   :  { %4480 = vmatpush3.bf16.msk.msra.mxu0 %vm4848_vm7, %v4478_v28 }
0x21ea   :  { %4493 = vmatprep.subr.bf16.mxu0 %v4697_v12 }
0x21ec   :  { %4271 = vmatmul.mubr.msk.f32.vlgmr.msra.gmra.mrb[52].mxu0 %vm250_vm9, %v5187_v2 }
0x21ed   :  { %4300 = vmatprep.mubr.msk.f32.mxu0 %vm4698_vm1, %v4699_v13  ;;  %4495 = vmatpush3.bf16.msra.mxu0 %v4494_v46 }
0x21ee   :  { %4496 = vmatprep.subr.bf16.mxu0 %v4697_v12 }
0x22bf   :  { %v3258_v17 = vpop.f32.mrb[52].mxu0 }
0x22c0   :  { %v3259_v18 = vadd.f32 %v5311_v45, %v3258_v17  ;;  %v4272_v19 = vpop.f32.mrb[53].mxu0 }
0x22c2   :  { %v3263_v24 = vmin.f32 %v3259_v18, 0.0  ;;  %vm3262_vm12 = vcmp.gt.f32.partialorder %v3259_v18, 0.0 }
0x22c4   :  { %v3264_v20 = vmul.f32 1.442695, %v3263_v24 }
0x22c6   :  { %4612 = vpow2.f32 %v3264_v20 }
0x22d0   :  { %v4613_v25 = vpop.eup %4612 }
0x22d1   :  { %v3752_v21 = vadd.f32 -1.0, %v4613_v25 }
0x22d3   :  { %v3267_v29 = vsel %vm3262_vm12, %v3259_v18, %v3752_v21 }
0x22d4   :  { %v3268_v22 = vsel %vm531_vm15, %v3267_v29, %v5327_v9 }
0x22d5   :  { %4290 = vmatmul.mubr.msk.f32.vlgmr.msra.gmra.mrb[38].mxu1 %vm1102_vm3, %v3268_v22 }
0x22d6   :  { %4322 = vmatprep.mubr.msk.f32.mxu1 %vm4698_vm1, %v4699_v13 }
0x23a8   :  { %v3338_v2 = vpop.f32.mrb[38].mxu1 }
0x23a9   :  { %v3339_v27 = vadd.f32 %v5321_v57, %v3338_v2  ;;  %v4291_v45 = vpop.f32.mrb[39].mxu1  ;;  %v3371_v57 = vld [vmem:[#allocation2 + $0xd0] sm:$0xff] }
0x23aa   :  { %v4497_v48 = vpack.c.bf16 %v3372_v47, %v3371_v57 }
0x23ab   :  { %3349 = vrot.lane.b32.xlu1 %v3339_v27, %s4701_s4  ;;  %v3342_v26 = vsub.f32 0.0, %v3339_v27 }
0x23ac   :  { %4498 = vmatpush3.bf16.msra.mxu0 %v4497_v48 }
0x23ad   :  { %v3343_v32 = vmul.f32 1.442695, %v3342_v26  ;;  %4499 = vmatprep.subr.bf16.mxu0 %v4697_v12 }
0x23af   :  { %4614 = vpow2.f32 %v3343_v32 }
0x23b9   :  { %v4615_v30 = vpop.eup %4614 }
0x23ba   :  { %v3345_v15 = vadd.f32 1.0, %v4615_v30 }
0x23bc   :  { %4616 = vrcp.f32 %v3345_v15 }
0x23c6   :  { %v4617_v16 = vpop.eup %4616 }
0x23c7   :  { %v3359_v50 = vsub.f32 1.0, %v4617_v16  ;;  %v3365_v31 = vmul.f32 %v4617_v16, %v5327_v9  ;;  %v4503_v9 = vpack.c.bf16 %v3459_v52, %v3458_v51 }
0x241d   :  { %v3350_v34 = vpop.permute.xlu1 %3349 }
0x241e   :  { %v3352_v40 = vmul.f32 %v4617_v16, %v3350_v34 }
0x2420   :  { %3354 = vrot.lane.b32.xlu1 %v3352_v40, %s4702_s30 }
0x2492   :  { %v3355_v36 = vpop.permute.xlu1 %3354 }
0x2493   :  { %v3357_v42 = vadd.f32 %v3355_v36, %v3339_v27 }
0x2495   :  { %4618 = vtanh.f32 %v3357_v42 }
0x249f   :  { %v4619_v37 = vpop.eup %4618 }
0x24a0   :  { %3361 = vrot.lane.b32.xlu0 %v4619_v37, %s4703_s14 }
0x2512   :  { %v3362_v54 = vpop.permute.xlu0 %3361 }
0x2513   :  { %v3364_v49 = vmul.f32 %v3362_v54, %v3359_v50 }
0x2515   :  { %v3366_v38 = vadd.f32 %v3365_v31, %v3364_v49 }
0x2517   :  { %v3367_v55 = vmax.f32 %v3366_v38, 0.0 }
0x2519   :  { %3379 = vrot.lane.b32.xlu1 %v3367_v55, %s4703_s14 }
0x258b   :  { %v3380_v7 = vpop.permute.xlu1 %3379 }
0x258c   :  { %4301 = vmatmul.mubr.msk.f32.vlgmr.msra.gmra.mrb[54].mxu0 %vm531_vm15, %v3380_v7 }
0x258d   :  { %4311 = vmatprep.mubr.msk.f32.mxu0 %vm4698_vm1, %v4699_v13  ;;  %4501 = vmatpush3.bf16.msra.mxu0 %v4500_v35  ;;  %v3541_v13 = vld [vmem:[#allocation2 + $0x100] sm:$0xff]  ;;  %vm3623_vm1 = vcmask 25600  }
0x258e   :  { %4502 = vmatprep.subr.bf16.mxu0 %v4697_v12  ;;  %v4506_v62 = vpack.c.bf16 %v3542_v6, %v3541_v13 }
0x2590   :  { %4507 = vmatpush3.bf16.msra.mxu1 %v4506_v62 }
0x2591   :  { %4504 = vmatpush3.bf16.msra.mxu0 %v4503_v9  ;;  %4508 = vmatprep.subr.bf16.mxu1 %v4697_v12 }
0x2594   :  { %4510 = vmatpush3.bf16.msra.mxu1 %v4509_v33 }
0x265f   :  { %v3449_v56 = vpop.f32.mrb[54].mxu0 }
0x2660   :  { %v3450_v60 = vadd.f32 %v3754_v59, %v3449_v56  ;;  %v4302_v61 = vpop.f32.mrb[55].mxu0 }
0x2662   :  { %v3453_v63 = vmul.f32 0.999995, %v3450_v60 }
0x2664   :  { %v3454_v0 = vmax.f32 %v3453_v63, 0.0 }
0x2666   :  { %4312 = vmatmul.mubr.msk.f32.vlgmr.msra.gmra.mrb[56].mxu0 %vm531_vm15, %v3454_v0 }
0x2739   :  { %v3534_v10 = vpop.f32.mrb[56].mxu0 }
0x273a   :  { %v3535_v4 = vadd.f32 %v3756_v3, %v3534_v10  ;;  %v4313_v5 = vpop.f32.mrb[57].mxu0 }
0x273c   :  { %v3538_v41 = vmul.f32 0.999995, %v3535_v4 }
0x273e   :  { %v3539_v8 = vmax.f32 %v3538_v41, 0.0 }
0x2740   :  { %4323 = vmatmul.mubr.msk.f32.vlgmr.msra.gmra.mrb[40].mxu1 %vm531_vm15, %v3539_v8 }
0x2813   :  { %v3619_v12 = vpop.f32.mrb[40].mxu1 }
0x2814   :  { %v3620_v14 = vadd.f32 %v3758_v39, %v3619_v12  ;;  %v4324_v44 = vpop.f32.mrb[41].mxu1 }
0x2816   :  { %3624 = vst.msk [vmem:[#allocation7] sm:$0x3] %vm3623_vm1, %v3620_v14 }
0x2817   :  { %4675 = shalt.err (!%p4672_p6)
}
0x2818   :  { %s4676_s17 = scalar_lea.hbm %s5444_s13, 32 }
0x2819   :  { %p4677_p7 = scmp.ne.s32.totalorder %s5444_s13, %s4676_s17  ;;  %p4680_p8 = scmp.lt.u32.totalorder %s4676_s17, %s5444_s13 }
0x281b   :  { %p4682_p9 = pnand %p4680_p8, %p4677_p7 }
0x281d   :  { %4685 = shalt.err (!%p4682_p9)
}
0x281e   :  { %3634 = dma.vmem_to_hbm [thread:$0]  %s3632_s2, 32, %s5444_s13, [#allocation4]  }
0x281f   :  { %4690 = dma.done.wait [#allocation4], 32  }
0x2820   :  { %4691 = vsyncadd [#allocation4], 4294967264 }
0x2821   :  { %3638 = vsyncpa [#allocation3], 1 }
0x2822   :  { %3639 = vsyncpa [#allocation6], 1 }
0x2823   :  { %3640 = vsyncpa [#allocation4], 1 }

</bundles_post_ra>
